<compile_context>
chip_gen: v6e
topology: v6e:2x2x1
jax: 0.10.0
libtpu: 0.0.40
codegen_flags: <defaults>
</compile_context>

<pallas_src>
import functools
import math

import jax
import jax.numpy as jnp
from jax.experimental import pallas as pl
from jax.experimental.pallas import tpu as pltpu

EPS = 1e-5


def _vmem_limit_bytes():
    """Generation-aware scoped-VMEM limit (v5e/v6e 128 MiB, v7x 64 MiB)."""
    cap = 128 << 20
    try:
        cap = int(getattr(pltpu.get_tpu_info(), "vmem_capacity_bytes", cap))
    except Exception:
        pass
    return max(32 << 20, min(int(cap * 3 // 4), 96 << 20))


def _pick_th(h, w, cin, cout, out_bytes, budget):
    """Row-tile height: whole image if it fits, else largest 8-aligned divisor."""
    def step_bytes(th):
        in_tile = (th + 2) * (w + 2) * cin * 2      # bf16 input tile
        out_tile = th * w * cout * out_bytes
        acc = th * w * cout * 4                     # f32 accumulator
        work = th * w * cin * 4                     # slice/relayout headroom
        return 3 * in_tile + 2 * out_tile + 2 * acc + work + 9 * cin * cout * 2
    if step_bytes(h) <= budget:
        return h
    cands = [t for t in range(8, h, 8) if h % t == 0 and step_bytes(t) <= budget]
    return max(cands) if cands else h


# --------------------- fused conv3x3 + batch-stat BN + ReLU -------------------

def _conv_bn_relu_kernel(x_ref, w_ref, gb_ref, o_ref,
                         sum_ref, sq_ref, scale_ref, shift_ref,
                         *, th, tw, cin, cout, inv_m):
    # x_ref : (TH+2, TW+2, Cin) bf16 padded tile (all rows are real rows, so
    #         every conv output row below contributes to the BN stats exactly).
    # w_ref : (9, Cin, Cout) bf16, tap k = dh*3 + dw.
    # gb_ref: (2, Cout) f32, row 0 = gamma, row 1 = beta.
    s = pl.program_id(0)
    first_tile = jnp.logical_and(pl.program_id(1) == 0, pl.program_id(2) == 0)

    @pl.when(jnp.logical_and(s == 0, first_tile))
    def _():
        sum_ref[...] = jnp.zeros_like(sum_ref)
        sq_ref[...] = jnp.zeros_like(sq_ref)

    # 3x3 conv as 9 shifted (Cin, Cout) matmuls, f32 accumulation on the MXU.
    # (Conv bias intentionally dropped: it cancels against the BN mean.)
    x = x_ref[...]
    acc = jnp.zeros((th * tw, cout), jnp.float32)
    for dh in range(3):
        for dw in range(3):
            lhs = x[dh:dh + th, dw:dw + tw, :].reshape(th * tw, cin)
            acc = acc + jnp.dot(lhs, w_ref[dh * 3 + dw],
                                preferred_element_type=jnp.float32)

    @pl.when(s == 0)
    def _():
        sum_ref[...] += jnp.sum(acc, axis=0, keepdims=True)
        sq_ref[...] += jnp.sum(acc * acc, axis=0, keepdims=True)

    @pl.when(s == 1)
    def _():
        @pl.when(first_tile)
        def _():
            mean = sum_ref[...] * inv_m
            var = jnp.maximum(sq_ref[...] * inv_m - mean * mean, 0.0)
            inv_std = jax.lax.rsqrt(var + EPS)
            g = gb_ref[0:1, :]
            scale_ref[...] = g * inv_std
            shift_ref[...] = gb_ref[1:2, :] - mean * g * inv_std
        y = jnp.maximum(acc * scale_ref[...] + shift_ref[...], 0.0)
        o_ref[...] = y.reshape(th, tw, cout).astype(o_ref.dtype)


def conv_bn_relu(x_nhwc, w_hwio, gamma, beta, *, out_dtype=jnp.bfloat16, th=None):
    n, h, wd, cin = x_nhwc.shape
    cout = w_hwio.shape[-1]
    out_bytes = 2 if out_dtype == jnp.bfloat16 else 4

    vmem_limit = _vmem_limit_bytes()
    if th is None:
        th = _pick_th(h, wd, cin, cout, out_bytes, vmem_limit // 3)
    if th >= h or h % th != 0:
        th = h
    ht = h // th

    # One fused pad+cast pass over the activation (replaces the old im2col).
    xpad = jnp.pad(x_nhwc.astype(jnp.bfloat16), ((0, 0), (1, 1), (1, 1), (0, 0)))
    if ht == 1:
        xt = xpad.reshape(n, 1, h + 2, wd + 2, cin)          # free reshape
    else:
        # Fallback for very tall images: replicate the 2 halo rows per tile.
        xt = jnp.stack([xpad[:, i * th:i * th + th + 2] for i in range(ht)], axis=1)

    w9 = w_hwio.astype(jnp.bfloat16).reshape(9, cin, cout)
    gb = jnp.stack([gamma, beta]).astype(jnp.float32)
    m = n * h * wd

    kern = functools.partial(_conv_bn_relu_kernel,
                             th=th, tw=wd, cin=cin, cout=cout, inv_m=1.0 / float(m))

    out = pl.pallas_call(
        kern,
        out_shape=jax.ShapeDtypeStruct((n, h, wd, cout), out_dtype),
        grid=(2, n, ht),   # (sweep: 0=stats, 1=recompute+BN+ReLU, batch, row-tile)
        in_specs=[
            pl.BlockSpec((None, None, th + 2, wd + 2, cin),
                         lambda s, b, t: (b, t, 0, 0, 0)),
            pl.BlockSpec((9, cin, cout), lambda s, b, t: (0, 0, 0)),
            pl.BlockSpec((2, cout), lambda s, b, t: (0, 0)),
        ],
        # During sweep 0 every step maps to block (0, 0) and the kernel never
        # writes it, so nothing is flushed; sweep 1 fills each block exactly
        # once and it is written back when the block index advances.
        out_specs=pl.BlockSpec((None, th, wd, cout),
                               lambda s, b, t: (s * b, s * t, 0, 0)),
        scratch_shapes=[
            pltpu.VMEM((1, cout), jnp.float32),   # per-channel sum
            pltpu.VMEM((1, cout), jnp.float32),   # per-channel sum of squares
            pltpu.VMEM((1, cout), jnp.float32),   # BN scale
            pltpu.VMEM((1, cout), jnp.float32),   # BN shift
        ],
        compiler_params=pltpu.CompilerParams(
            dimension_semantics=("arbitrary", "arbitrary", "arbitrary"),
            vmem_limit_bytes=vmem_limit),
        cost_estimate=pl.CostEstimate(
            flops=2 * 2 * m * 9 * cin * cout,
            transcendentals=cout,
            bytes_accessed=2 * xt.size * 2 + w9.size * 2 + gb.size * 4
                           + n * h * wd * cout * out_bytes),
    )(xt, w9, gb)
    return out


# ------------------------------- module wrapper -------------------------------

def init_upblock_low(key, in_channels, out_channels, nb_conv):
    """Deterministic synthetic parameters (shapes match the PyTorch module)."""
    params = []
    cin = in_channels
    for _ in range(nb_conv):
        key, k1, k2, k3, k4 = jax.random.split(key, 5)
        fan_in = 9 * cin
        w = jax.random.normal(k1, (3, 3, cin, out_channels), jnp.float32) / math.sqrt(fan_in)
        b = 0.1 * jax.random.normal(k2, (out_channels,), jnp.float32)
        gamma = 1.0 + 0.1 * jax.random.normal(k3, (out_channels,), jnp.float32)
        beta = 0.1 * jax.random.normal(k4, (out_channels,), jnp.float32)
        params.append((w, b, gamma, beta))
        cin = out_channels
    return params


def upblock_low_forward(params, x_nchw):
    # self.up (nn.Upsample) is unused in the PyTorch forward -> not applied.
    x = jnp.transpose(x_nchw, (0, 2, 3, 1))          # NCHW -> NHWC
    last = len(params) - 1
    for li, (w, b, gamma, beta) in enumerate(params):
        del b  # exactly cancelled by the BN mean subtraction
        out_dtype = jnp.float32 if li == last else jnp.bfloat16
        x = conv_bn_relu(x, w, gamma, beta, out_dtype=out_dtype)
    return jnp.transpose(x, (0, 3, 1, 2))            # NHWC -> NCHW


def ref_forward(params, x_nchw):
    """Pure-JAX reference (lax.conv + batch-stat BN + ReLU), bias included."""
    x = jnp.transpose(x_nchw, (0, 2, 3, 1))
    for (w, b, gamma, beta) in params:
        conv = jax.lax.conv_general_dilated(
            x, w, window_strides=(1, 1), padding="SAME",
            dimension_numbers=("NHWC", "HWIO", "NHWC")) + b
        mean = conv.mean(axis=(0, 1, 2))
        var = conv.var(axis=(0, 1, 2))   # biased, as in PyTorch BN training forward
        y = gamma * (conv - mean) * jax.lax.rsqrt(var + EPS) + beta
        x = jnp.maximum(y, 0.0)
    return jnp.transpose(x, (0, 3, 1, 2))


if __name__ == "__main__":
    key = jax.random.PRNGKey(0)
    k_param, k_x = jax.random.split(key)

    in_channels, out_channels, nb_conv = 4, 8, 2
    x = jax.random.normal(k_x, (2, in_channels, 16, 16), jnp.float32)   # NCHW

    params = init_upblock_low(k_param, in_channels, out_channels, nb_conv)

    out = jax.block_until_ready(upblock_low_forward(params, x))
    ref = jax.block_until_ready(ref_forward(params, x))

    assert out.shape == (2, out_channels, 16, 16), out.shape
    err = float(jnp.max(jnp.abs(out - ref)))
    assert jnp.allclose(out, ref, rtol=5e-2, atol=5e-2), err

    print("KERNEL_OK")
</pallas_src>

<mosaic_0001>
module attributes {stable_mosaic.version = 11 : i64} {
  func.func @_conv_bn_relu_kernel(%arg0: i32, %arg1: i32, %arg2: i32, %arg3: memref<1x1x18x18x4xbf16, #tpu.memory_space<vmem>>, %arg4: memref<9x4x8xbf16, #tpu.memory_space<vmem>>, %arg5: memref<2x8xf32, #tpu.memory_space<vmem>>, %arg6: memref<1x16x16x8xbf16, #tpu.memory_space<vmem>>, %arg7: memref<1x8xf32, #tpu.memory_space<vmem>>, %arg8: memref<1x8xf32, #tpu.memory_space<vmem>>, %arg9: memref<1x8xf32, #tpu.memory_space<vmem>>, %arg10: memref<1x8xf32, #tpu.memory_space<vmem>>) attributes {dimension_semantics = [#tpu.dimension_semantics<arbitrary>, #tpu.dimension_semantics<arbitrary>, #tpu.dimension_semantics<arbitrary>], iteration_bounds = array<i64: 2, 2, 1>, scalar_prefetch = 0 : i64, scratch_operands = 4 : i64, tpu.core_type = #tpu.core_type<tc>, window_params = [{transform_indices = @transform_0, window_bounds = array<i64: 1, 1, 18, 18, 4>}, {pipeline_mode = #tpu.pipeline_mode<synchronous>, transform_indices = @transform_1, window_bounds = array<i64: 9, 4, 8>}, {pipeline_mode = #tpu.pipeline_mode<synchronous>, transform_indices = @transform_2, window_bounds = array<i64: 2, 8>}, {transform_indices = @transform_3, window_bounds = array<i64: 1, 16, 16, 8>}]} {
    %c0_i32 = arith.constant 0 : i32
    %0 = arith.cmpi eq, %arg1, %c0_i32 : i32
    %c0_i32_0 = arith.constant 0 : i32
    %1 = arith.cmpi eq, %arg2, %c0_i32_0 : i32
    %2 = arith.andi %0, %1 : i1
    %c0_i32_1 = arith.constant 0 : i32
    %3 = arith.cmpi eq, %arg0, %c0_i32_1 : i32
    %4 = arith.andi %3, %2 : i1
    %5 = arith.extui %4 : i1 to i32
    %c0_i32_2 = arith.constant 0 : i32
    %6 = arith.cmpi ne, %5, %c0_i32_2 : i32
    scf.if %6 {
      %cst_38 = arith.constant 0.000000e+00 : f32
      %70 = vector.broadcast %cst_38 : f32 to vector<1x8xf32>
      %c0_39 = arith.constant 0 : index
      %c0_40 = arith.constant 0 : index
      %71 = vector.load %arg7[%c0_39, %c0_40] : memref<1x8xf32, #tpu.memory_space<vmem>>, vector<1x8xf32>
      tpu.vector_store %arg7[%c0_39, %c0_40], %70 {strides = array<i32>} : memref<1x8xf32, #tpu.memory_space<vmem>>, vector<1x8xf32>,
      %cst_41 = arith.constant 0.000000e+00 : f32
      %72 = vector.broadcast %cst_41 : f32 to vector<1x8xf32>
      %c0_42 = arith.constant 0 : index
      %c0_43 = arith.constant 0 : index
      %73 = vector.load %arg8[%c0_42, %c0_43] : memref<1x8xf32, #tpu.memory_space<vmem>>, vector<1x8xf32>
      tpu.vector_store %arg8[%c0_42, %c0_43], %72 {strides = array<i32>} : memref<1x8xf32, #tpu.memory_space<vmem>>, vector<1x8xf32>,
    } else {
    }
    %c0 = arith.constant 0 : index
    %c0_3 = arith.constant 0 : index
    %c0_4 = arith.constant 0 : index
    %c0_5 = arith.constant 0 : index
    %c0_6 = arith.constant 0 : index
    %7 = vector.load %arg3[%c0, %c0_3, %c0_4, %c0_5, %c0_6] : memref<1x1x18x18x4xbf16, #tpu.memory_space<vmem>>, vector<1x1x18x18x4xbf16>
    %8 = vector.shape_cast %7 : vector<1x1x18x18x4xbf16> to vector<18x18x4xbf16>
    %cst = arith.constant 0.000000e+00 : f32
    %9 = vector.broadcast %cst : f32 to vector<256x8xf32>
    %10 = vector.extract_strided_slice %8 {offsets = [0, 0, 0], sizes = [16, 16, 4], strides = [1, 1, 1]} : vector<18x18x4xbf16> to vector<16x16x4xbf16>
    %11 = vector.shape_cast %10 : vector<16x16x4xbf16> to vector<256x4xbf16>
    %c0_7 = arith.constant 0 : index
    %c0_8 = arith.constant 0 : index
    %c0_9 = arith.constant 0 : index
    %12 = vector.load %arg4[%c0_7, %c0_8, %c0_9] : memref<9x4x8xbf16, #tpu.memory_space<vmem>>, vector<1x4x8xbf16>
    %13 = vector.shape_cast %12 : vector<1x4x8xbf16> to vector<4x8xbf16>
    %cst_10 = arith.constant dense<0.000000e+00> : vector<256x8xf32>
    %14 = tpu.matmul %11, %13, %cst_10 {dimension_numbers = #tpu.dot_dimension_numbers<[1], [0], [0], [1], [0, 0, 1, 1], [], []>} : vector<256x4xbf16>, vector<4x8xbf16>, vector<256x8xf32> -> vector<256x8xf32>
    %15 = arith.addf %9, %14 : vector<256x8xf32>
    %16 = vector.extract_strided_slice %8 {offsets = [0, 1, 0], sizes = [16, 16, 4], strides = [1, 1, 1]} : vector<18x18x4xbf16> to vector<16x16x4xbf16>
    %17 = vector.shape_cast %16 : vector<16x16x4xbf16> to vector<256x4xbf16>
    %c1 = arith.constant 1 : index
    %c0_11 = arith.constant 0 : index
    %c0_12 = arith.constant 0 : index
    %18 = vector.load %arg4[%c1, %c0_11, %c0_12] : memref<9x4x8xbf16, #tpu.memory_space<vmem>>, vector<1x4x8xbf16>
    %19 = vector.shape_cast %18 : vector<1x4x8xbf16> to vector<4x8xbf16>
    %cst_13 = arith.constant dense<0.000000e+00> : vector<256x8xf32>
    %20 = tpu.matmul %17, %19, %cst_13 {dimension_numbers = #tpu.dot_dimension_numbers<[1], [0], [0], [1], [0, 0, 1, 1], [], []>} : vector<256x4xbf16>, vector<4x8xbf16>, vector<256x8xf32> -> vector<256x8xf32>
    %21 = arith.addf %15, %20 : vector<256x8xf32>
    %22 = vector.extract_strided_slice %8 {offsets = [0, 2, 0], sizes = [16, 16, 4], strides = [1, 1, 1]} : vector<18x18x4xbf16> to vector<16x16x4xbf16>
    %23 = vector.shape_cast %22 : vector<16x16x4xbf16> to vector<256x4xbf16>
    %c2 = arith.constant 2 : index
    %c0_14 = arith.constant 0 : index
    %c0_15 = arith.constant 0 : index
    %24 = vector.load %arg4[%c2, %c0_14, %c0_15] : memref<9x4x8xbf16, #tpu.memory_space<vmem>>, vector<1x4x8xbf16>
    %25 = vector.shape_cast %24 : vector<1x4x8xbf16> to vector<4x8xbf16>
    %cst_16 = arith.constant dense<0.000000e+00> : vector<256x8xf32>
    %26 = tpu.matmul %23, %25, %cst_16 {dimension_numbers = #tpu.dot_dimension_numbers<[1], [0], [0], [1], [0, 0, 1, 1], [], []>} : vector<256x4xbf16>, vector<4x8xbf16>, vector<256x8xf32> -> vector<256x8xf32>
    %27 = arith.addf %21, %26 : vector<256x8xf32>
    %28 = vector.extract_strided_slice %8 {offsets = [1, 0, 0], sizes = [16, 16, 4], strides = [1, 1, 1]} : vector<18x18x4xbf16> to vector<16x16x4xbf16>
    %29 = vector.shape_cast %28 : vector<16x16x4xbf16> to vector<256x4xbf16>
    %c3 = arith.constant 3 : index
    %c0_17 = arith.constant 0 : index
    %c0_18 = arith.constant 0 : index
    %30 = vector.load %arg4[%c3, %c0_17, %c0_18] : memref<9x4x8xbf16, #tpu.memory_space<vmem>>, vector<1x4x8xbf16>
    %31 = vector.shape_cast %30 : vector<1x4x8xbf16> to vector<4x8xbf16>
    %cst_19 = arith.constant dense<0.000000e+00> : vector<256x8xf32>
    %32 = tpu.matmul %29, %31, %cst_19 {dimension_numbers = #tpu.dot_dimension_numbers<[1], [0], [0], [1], [0, 0, 1, 1], [], []>} : vector<256x4xbf16>, vector<4x8xbf16>, vector<256x8xf32> -> vector<256x8xf32>
    %33 = arith.addf %27, %32 : vector<256x8xf32>
    %34 = vector.extract_strided_slice %8 {offsets = [1, 1, 0], sizes = [16, 16, 4], strides = [1, 1, 1]} : vector<18x18x4xbf16> to vector<16x16x4xbf16>
    %35 = vector.shape_cast %34 : vector<16x16x4xbf16> to vector<256x4xbf16>
    %c4 = arith.constant 4 : index
    %c0_20 = arith.constant 0 : index
    %c0_21 = arith.constant 0 : index
    %36 = vector.load %arg4[%c4, %c0_20, %c0_21] : memref<9x4x8xbf16, #tpu.memory_space<vmem>>, vector<1x4x8xbf16>
    %37 = vector.shape_cast %36 : vector<1x4x8xbf16> to vector<4x8xbf16>
    %cst_22 = arith.constant dense<0.000000e+00> : vector<256x8xf32>
    %38 = tpu.matmul %35, %37, %cst_22 {dimension_numbers = #tpu.dot_dimension_numbers<[1], [0], [0], [1], [0, 0, 1, 1], [], []>} : vector<256x4xbf16>, vector<4x8xbf16>, vector<256x8xf32> -> vector<256x8xf32>
    %39 = arith.addf %33, %38 : vector<256x8xf32>
    %40 = vector.extract_strided_slice %8 {offsets = [1, 2, 0], sizes = [16, 16, 4], strides = [1, 1, 1]} : vector<18x18x4xbf16> to vector<16x16x4xbf16>
    %41 = vector.shape_cast %40 : vector<16x16x4xbf16> to vector<256x4xbf16>
    %c5 = arith.constant 5 : index
    %c0_23 = arith.constant 0 : index
    %c0_24 = arith.constant 0 : index
    %42 = vector.load %arg4[%c5, %c0_23, %c0_24] : memref<9x4x8xbf16, #tpu.memory_space<vmem>>, vector<1x4x8xbf16>
    %43 = vector.shape_cast %42 : vector<1x4x8xbf16> to vector<4x8xbf16>
    %cst_25 = arith.constant dense<0.000000e+00> : vector<256x8xf32>
    %44 = tpu.matmul %41, %43, %cst_25 {dimension_numbers = #tpu.dot_dimension_numbers<[1], [0], [0], [1], [0, 0, 1, 1], [], []>} : vector<256x4xbf16>, vector<4x8xbf16>, vector<256x8xf32> -> vector<256x8xf32>
    %45 = arith.addf %39, %44 : vector<256x8xf32>
    %46 = vector.extract_strided_slice %8 {offsets = [2, 0, 0], sizes = [16, 16, 4], strides = [1, 1, 1]} : vector<18x18x4xbf16> to vector<16x16x4xbf16>
    %47 = vector.shape_cast %46 : vector<16x16x4xbf16> to vector<256x4xbf16>
    %c6 = arith.constant 6 : index
    %c0_26 = arith.constant 0 : index
    %c0_27 = arith.constant 0 : index
    %48 = vector.load %arg4[%c6, %c0_26, %c0_27] : memref<9x4x8xbf16, #tpu.memory_space<vmem>>, vector<1x4x8xbf16>
    %49 = vector.shape_cast %48 : vector<1x4x8xbf16> to vector<4x8xbf16>
    %cst_28 = arith.constant dense<0.000000e+00> : vector<256x8xf32>
    %50 = tpu.matmul %47, %49, %cst_28 {dimension_numbers = #tpu.dot_dimension_numbers<[1], [0], [0], [1], [0, 0, 1, 1], [], []>} : vector<256x4xbf16>, vector<4x8xbf16>, vector<256x8xf32> -> vector<256x8xf32>
    %51 = arith.addf %45, %50 : vector<256x8xf32>
    %52 = vector.extract_strided_slice %8 {offsets = [2, 1, 0], sizes = [16, 16, 4], strides = [1, 1, 1]} : vector<18x18x4xbf16> to vector<16x16x4xbf16>
    %53 = vector.shape_cast %52 : vector<16x16x4xbf16> to vector<256x4xbf16>
    %c7 = arith.constant 7 : index
    %c0_29 = arith.constant 0 : index
    %c0_30 = arith.constant 0 : index
    %54 = vector.load %arg4[%c7, %c0_29, %c0_30] : memref<9x4x8xbf16, #tpu.memory_space<vmem>>, vector<1x4x8xbf16>
    %55 = vector.shape_cast %54 : vector<1x4x8xbf16> to vector<4x8xbf16>
    %cst_31 = arith.constant dense<0.000000e+00> : vector<256x8xf32>
    %56 = tpu.matmul %53, %55, %cst_31 {dimension_numbers = #tpu.dot_dimension_numbers<[1], [0], [0], [1], [0, 0, 1, 1], [], []>} : vector<256x4xbf16>, vector<4x8xbf16>, vector<256x8xf32> -> vector<256x8xf32>
    %57 = arith.addf %51, %56 : vector<256x8xf32>
    %58 = vector.extract_strided_slice %8 {offsets = [2, 2, 0], sizes = [16, 16, 4], strides = [1, 1, 1]} : vector<18x18x4xbf16> to vector<16x16x4xbf16>
    %59 = vector.shape_cast %58 : vector<16x16x4xbf16> to vector<256x4xbf16>
    %c8 = arith.constant 8 : index
    %c0_32 = arith.constant 0 : index
    %c0_33 = arith.constant 0 : index
    %60 = vector.load %arg4[%c8, %c0_32, %c0_33] : memref<9x4x8xbf16, #tpu.memory_space<vmem>>, vector<1x4x8xbf16>
    %61 = vector.shape_cast %60 : vector<1x4x8xbf16> to vector<4x8xbf16>
    %cst_34 = arith.constant dense<0.000000e+00> : vector<256x8xf32>
    %62 = tpu.matmul %59, %61, %cst_34 {dimension_numbers = #tpu.dot_dimension_numbers<[1], [0], [0], [1], [0, 0, 1, 1], [], []>} : vector<256x4xbf16>, vector<4x8xbf16>, vector<256x8xf32> -> vector<256x8xf32>
    %63 = arith.addf %57, %62 : vector<256x8xf32>
    %c0_i32_35 = arith.constant 0 : i32
    %64 = arith.cmpi eq, %arg0, %c0_i32_35 : i32
    %65 = arith.extui %64 : i1 to i32
    %c0_i32_36 = arith.constant 0 : i32
    %66 = arith.cmpi ne, %65, %c0_i32_36 : i32
    scf.if %66 {
      %c0_38 = arith.constant 0 : index
      %c0_39 = arith.constant 0 : index
      %70 = vector.load %arg7[%c0_38, %c0_39] : memref<1x8xf32, #tpu.memory_space<vmem>>, vector<1x8xf32>
      %cst_40 = arith.constant dense<0.000000e+00> : vector<8xf32>
      %71 = vector.multi_reduction <add>, %63, %cst_40 [0] : vector<256x8xf32> to vector<8xf32>
      %72 = vector.shape_cast %71 : vector<8xf32> to vector<1x8xf32>
      %73 = arith.addf %70, %72 : vector<1x8xf32>
      %c0_41 = arith.constant 0 : index
      %c0_42 = arith.constant 0 : index
      %74 = vector.load %arg7[%c0_41, %c0_42] : memref<1x8xf32, #tpu.memory_space<vmem>>, vector<1x8xf32>
      tpu.vector_store %arg7[%c0_41, %c0_42], %73 {strides = array<i32>} : memref<1x8xf32, #tpu.memory_space<vmem>>, vector<1x8xf32>,
      %c0_43 = arith.constant 0 : index
      %c0_44 = arith.constant 0 : index
      %75 = vector.load %arg8[%c0_43, %c0_44] : memref<1x8xf32, #tpu.memory_space<vmem>>, vector<1x8xf32>
      %76 = arith.mulf %63, %63 : vector<256x8xf32>
      %cst_45 = arith.constant dense<0.000000e+00> : vector<8xf32>
      %77 = vector.multi_reduction <add>, %76, %cst_45 [0] : vector<256x8xf32> to vector<8xf32>
      %78 = vector.shape_cast %77 : vector<8xf32> to vector<1x8xf32>
      %79 = arith.addf %75, %78 : vector<1x8xf32>
      %c0_46 = arith.constant 0 : index
      %c0_47 = arith.constant 0 : index
      %80 = vector.load %arg8[%c0_46, %c0_47] : memref<1x8xf32, #tpu.memory_space<vmem>>, vector<1x8xf32>
      tpu.vector_store %arg8[%c0_46, %c0_47], %79 {strides = array<i32>} : memref<1x8xf32, #tpu.memory_space<vmem>>, vector<1x8xf32>,
    } else {
    }
    %c1_i32 = arith.constant 1 : i32
    %67 = arith.cmpi eq, %arg0, %c1_i32 : i32
    %68 = arith.extui %67 : i1 to i32
    %c0_i32_37 = arith.constant 0 : i32
    %69 = arith.cmpi ne, %68, %c0_i32_37 : i32
    scf.if %69 {
      %70 = arith.extui %2 : i1 to i32
      %c0_i32_38 = arith.constant 0 : i32
      %71 = arith.cmpi ne, %70, %c0_i32_38 : i32
      scf.if %71 {
        %c0_48 = arith.constant 0 : index
        %c0_49 = arith.constant 0 : index
        %85 = vector.load %arg7[%c0_48, %c0_49] : memref<1x8xf32, #tpu.memory_space<vmem>>, vector<1x8xf32>
        %cst_50 = arith.constant 0.001953125 : f32
        %86 = vector.broadcast %cst_50 : f32 to vector<1x8xf32>
        %87 = arith.mulf %85, %86 : vector<1x8xf32>
        %c0_51 = arith.constant 0 : index
        %c0_52 = arith.constant 0 : index
        %88 = vector.load %arg8[%c0_51, %c0_52] : memref<1x8xf32, #tpu.memory_space<vmem>>, vector<1x8xf32>
        %cst_53 = arith.constant 0.001953125 : f32
        %89 = vector.broadcast %cst_53 : f32 to vector<1x8xf32>
        %90 = arith.mulf %88, %89 : vector<1x8xf32>
        %91 = arith.mulf %87, %87 : vector<1x8xf32>
        %92 = arith.subf %90, %91 : vector<1x8xf32>
        %cst_54 = arith.constant 0.000000e+00 : f32
        %93 = vector.broadcast %cst_54 : f32 to vector<1x8xf32>
        %94 = arith.maximumf %92, %93 : vector<1x8xf32>
        %cst_55 = arith.constant 9.99999974E-6 : f32
        %95 = vector.broadcast %cst_55 : f32 to vector<1x8xf32>
        %96 = arith.addf %94, %95 : vector<1x8xf32>
        %97 = math.rsqrt %96 : vector<1x8xf32>
        %c0_56 = arith.constant 0 : index
        %c0_57 = arith.constant 0 : index
        %98 = vector.load %arg5[%c0_56, %c0_57] : memref<2x8xf32, #tpu.memory_space<vmem>>, vector<1x8xf32>
        %99 = arith.mulf %98, %97 : vector<1x8xf32>
        %c0_58 = arith.constant 0 : index
        %c0_59 = arith.constant 0 : index
        %100 = vector.load %arg9[%c0_58, %c0_59] : memref<1x8xf32, #tpu.memory_space<vmem>>, vector<1x8xf32>
        tpu.vector_store %arg9[%c0_58, %c0_59], %99 {strides = array<i32>} : memref<1x8xf32, #tpu.memory_space<vmem>>, vector<1x8xf32>,
        %c1_60 = arith.constant 1 : index
        %c0_61 = arith.constant 0 : index
        %101 = vector.load %arg5[%c1_60, %c0_61] : memref<2x8xf32, #tpu.memory_space<vmem>>, vector<1x8xf32>
        %102 = arith.mulf %87, %98 : vector<1x8xf32>
        %103 = arith.mulf %102, %97 : vector<1x8xf32>
        %104 = arith.subf %101, %103 : vector<1x8xf32>
        %c0_62 = arith.constant 0 : index
        %c0_63 = arith.constant 0 : index
        %105 = vector.load %arg10[%c0_62, %c0_63] : memref<1x8xf32, #tpu.memory_space<vmem>>, vector<1x8xf32>
        tpu.vector_store %arg10[%c0_62, %c0_63], %104 {strides = array<i32>} : memref<1x8xf32, #tpu.memory_space<vmem>>, vector<1x8xf32>,
      } else {
      }
      %c0_39 = arith.constant 0 : index
      %c0_40 = arith.constant 0 : index
      %72 = vector.load %arg9[%c0_39, %c0_40] : memref<1x8xf32, #tpu.memory_space<vmem>>, vector<1x8xf32>
      %73 = vector.broadcast %72 : vector<1x8xf32> to vector<256x8xf32>
      %74 = arith.mulf %63, %73 : vector<256x8xf32>
      %c0_41 = arith.constant 0 : index
      %c0_42 = arith.constant 0 : index
      %75 = vector.load %arg10[%c0_41, %c0_42] : memref<1x8xf32, #tpu.memory_space<vmem>>, vector<1x8xf32>
      %76 = vector.broadcast %75 : vector<1x8xf32> to vector<256x8xf32>
      %77 = arith.addf %74, %76 : vector<256x8xf32>
      %cst_43 = arith.constant 0.000000e+00 : f32
      %78 = vector.broadcast %cst_43 : f32 to vector<256x8xf32>
      %79 = arith.maximumf %77, %78 : vector<256x8xf32>
      %80 = vector.shape_cast %79 : vector<256x8xf32> to vector<16x16x8xf32>
      %81 = arith.truncf %80 : vector<16x16x8xf32> to vector<16x16x8xbf16>
      %c0_44 = arith.constant 0 : index
      %c0_45 = arith.constant 0 : index
      %c0_46 = arith.constant 0 : index
      %c0_47 = arith.constant 0 : index
      %82 = vector.load %arg6[%c0_44, %c0_45, %c0_46, %c0_47] : memref<1x16x16x8xbf16, #tpu.memory_space<vmem>>, vector<1x16x16x8xbf16>
      %83 = vector.shape_cast %82 : vector<1x16x16x8xbf16> to vector<16x16x8xbf16>
      %84 = vector.shape_cast %81 : vector<16x16x8xbf16> to vector<1x16x16x8xbf16>
      tpu.vector_store %arg6[%c0_44, %c0_45, %c0_46, %c0_47], %84 {strides = array<i32>} : memref<1x16x16x8xbf16, #tpu.memory_space<vmem>>, vector<1x16x16x8xbf16>,
    } else {
    }
    return
  }
  func.func @transform_0(%arg0: i32, %arg1: i32, %arg2: i32) -> (i32, i32, i32, i32, i32) {
    %c0_i32 = arith.constant 0 : i32
    %c0_i32_0 = arith.constant 0 : i32
    %c0_i32_1 = arith.constant 0 : i32
    %c0_i32_2 = arith.constant 0 : i32
    return %arg1, %arg2, %c0_i32, %c0_i32_0, %c0_i32_1 : i32, i32, i32, i32, i32
  }
  func.func @transform_1(%arg0: i32, %arg1: i32, %arg2: i32) -> (i32, i32, i32) {
    %c0_i32 = arith.constant 0 : i32
    %c0_i32_0 = arith.constant 0 : i32
    %c0_i32_1 = arith.constant 0 : i32
    %c0_i32_2 = arith.constant 0 : i32
    return %c0_i32, %c0_i32_0, %c0_i32_1 : i32, i32, i32
  }
  func.func @transform_2(%arg0: i32, %arg1: i32, %arg2: i32) -> (i32, i32) {
    %c0_i32 = arith.constant 0 : i32
    %c0_i32_0 = arith.constant 0 : i32
    %c0_i32_1 = arith.constant 0 : i32
    return %c0_i32, %c0_i32_0 : i32, i32
  }
  func.func @transform_3(%arg0: i32, %arg1: i32, %arg2: i32) -> (i32, i32, i32, i32) {
    %0 = arith.muli %arg0, %arg1 : i32
    %1 = arith.muli %arg0, %arg2 : i32
    %c0_i32 = arith.constant 0 : i32
    %c0_i32_0 = arith.constant 0 : i32
    %c0_i32_1 = arith.constant 0 : i32
    return %0, %1, %c0_i32, %c0_i32_0 : i32, i32, i32, i32
  }
}

</mosaic_0001>

<bundles_post_ra>
// kernel: tpu_custom_call.1
= control target key start
LH: loop header
LB: loop body
LE: loop exit
PB: predicated region body
PF: predicated region fallthrough
CT: control target
= control target key end

     0   :  { %s4438_s12 = smov 0   ;;  %s4440_s13 = smov 0   ;;  %s6227_s0 = inlined_call_operand.vmem [shape: bf16[2,1,18,18,4], index: 0, kind: input, shape index: {}]   ;;  %s6228_s1 = inlined_call_operand.vmem [shape: bf16[9,4,8], index: 1, kind: input, shape index: {}]   ;;  %s6229_s2 = inlined_call_operand.vmem [shape: f32[2,8], index: 2, kind: input, shape index: {}]   ;;  %s6230_s3 = inlined_call_operand.vmem [shape: bf16[2,16,16,8], index: 3, kind: output, shape index: {}]  }
   0x1   :  { %s4442_s14 = smov 0   ;;  %s4444_s15 = smov 0  }
   0x2   :  { %s4446_s16 = smov 0  }
   0x3 LB: > { %s28_s17 = sadd.s32 1, %s4407_s14  ;;  %s32_s18 = sadd.s32 1, %s4411_s15  ;;  %s4415_s16 = sphi %s4446_s16, %s13_s16   ;;  %s4411_s15 = sphi %s4444_s15, %s6348_s15   ;;  %s4407_s14 = sphi %s4442_s14, %s6347_s14   ;;  %s4403_s13 = sphi %s4440_s13, %s6346_s13   ;;  %s4399_s12 = sphi %s4438_s12, %s6345_s12  }
   0x4   : > { %p30_p0 = scmp.ge.s32.totalorder %s28_s17, 2  ;;  %p3543_p1 = scmp.ge.s32.totalorder %s4415_s16, 1 }
   0x5   : > { %p168_p2 = scmp.lt.s32.totalorder %s4415_s16, 5 }
   0x6   : > { %s6350_s17 = smov (%p30_p0, %s28_s17), 0  ;;  %s6352_s18 = smov (!%p30_p0, %s32_s18), %s4411_s15 }
   0x7   : > { %p169_p3 = pnand %p3543_p1, %p168_p2  ;;  %p34_p4 = scmp.ge.s32.totalorder %s6352_s18, 2 }
   0x9   : > { %s6354_s18 = smov (%p34_p4, %s6352_s18), 0  ;;  %172 = sbr.rel (%p169_p3) target bundleno = 730 (0x2da), region = 32 }
   0xe   : > { %p203_p5 = scmp.lt.s32.totalorder %s4399_s12, 1  ;;  %s212_s19 = smul.u32 %s4399_s12, %s4403_s13 }
   0xf   : > { %p228_p6 = scmp.eq.s32.totalorder %s4399_s12, 0  ;;  %p232_p7 = scmp.eq.s32.totalorder %s4403_s13, 0 }
  0x10   : > { %s204_s20 = scalar_select %p203_p5, %s4399_s12, 1 }
  0x11   : > { %p215_p8 = scmp.lt.s32.totalorder %s212_s19, 1  ;;  %p233_p9 = pnand %p232_p7, %p228_p6 }
  0x12   : > { %s4315_s21 = smul.u32 216, %s204_s20 }
  0x13   : > { %s6356_s19 = smov (!%p215_p8, %s212_s19), 1  ;;  %236 = sbr.rel (%p233_p9) target bundleno = 26 (0x1a), region = 36 }
  0x14   : > { %s4483_s24 = scalar_lea.vmem %s6227_s0, %s4315_s21  ;;  %s3810_s25 = sshll.u32 %s6356_s19, 7 }
  0x15   : > { %s4488_s28 = scalar_lea.vmem %s6230_s3, %s3810_s25 }
  0x18   : > { %vm237_vm0 = vcmask 57344   ;;  %v4417_v0 = vmov 0.0  }
  0x19   : > { %238 = vst.msk [vmem:[#allocation2] sm:$0x1] %vm237_vm0, %v4417_v0  ;;  %239 = vst.msk [vmem:[#allocation3] sm:$0x1] %vm237_vm0, %v4417_v0 }
  0x1a PF: > { %v3548_v1 = vld [vmem:[%s6228_s1 + $0x2] sm:$0x3]  ;;  %vm781_vm1 = vcmask 1041408   ;;  %v4500_v4 = vld [vmem:[%s4483_s24 + $0x4] sm:$0xf]  ;;  %vm732_vm4 = vcmask 31744  }
  0x1b   : > { %v4494_v2 = vld [vmem:[%s4483_s24] sm:$0xf]  ;;  %4306 = vmatprep.subr.msk.bf16.mxu1 %vm781_vm1, %v3548_v1  ;;  %4305 = vmatprep.subr.msk.bf16.mxu0 %vm781_vm1, %v3548_v1  ;;  %v783_v3 = vsel %vm781_vm1, %v3548_v1, 0  ;;  %v4503_v5 = vld [vmem:[%s4483_s24 + $0x8] sm:$0x1]  ;;  %v308_v8 = vshll.u32 %v4500_v4, 16 }
  0x1c   : > { %v299_v6 = vshrl.u32 %v4494_v2, 16  ;;  %4304 = vmatpush3.bf16.msra.mxu1 %v783_v3  ;;  %3998 = vmatpush3.bf16.msra.mxu0 %v783_v3  ;;  %vm295_vm2 = vsmask.f32 3328  ;;  %vm296_vm3 = vsmask.f32 7440  ;;  %v302_v7 = vshll.u32 %v4494_v2, 16 }
  0x1d   : > { %v312_v10 = vshrl.u32 %v4500_v4, 16  ;;  %v318_v11 = vshll.u32 %v4503_v5, 16  ;;  %v4511_v12 = vld [vmem:[%s4483_s24 + $0x60] sm:$0xf]  ;;  %v310_v14 = vrot.slane %v308_v8, 5  ;;  %vm4534_vm5 = vmor %vm295_vm2, %vm296_vm3  ;;  %v6273_v27 = vmov 0 }
  0x1e   : > { %v301_v9 = vrot.slane %v299_v6, 4  ;;  %v304_v13 = vrot.slane %v302_v7, 5  ;;  %v4514_v15 = vld [vmem:[%s4483_s24 + $0x64] sm:$0xf]  ;;  %v4517_v16 = vld [vmem:[%s4483_s24 + $0x68] sm:$0x1] }
  0x1f   : > { %v314_v17 = vrot.slane %v312_v10, 4  ;;  %v491_v19 = vshrl.u32 %v4511_v12, 16  ;;  %v494_v20 = vshll.u32 %v4511_v12, 16  ;;  %v294_v21 = vld [vmem:[%s6228_s1] sm:$0x3]  ;;  %v500_v23 = vshll.u32 %v4514_v15, 16 }
  0x20   : > { %v305_v22 = vor.u32 %v304_v13, %v301_v9  ;;  %v504_v24 = vshrl.u32 %v4514_v15, 16  ;;  %v510_v25 = vshll.u32 %v4517_v16, 16  ;;  %4307 = vmatprep.subr.msk.bf16.mxu1 %vm781_vm1, %v294_v21  ;;  %v4530_v26 = vld [vmem:[%s4483_s24 + $0xc] sm:$0xf]  ;;  %v6274_v27 = vsel %vm4534_vm5, 4294967295, %v6273_v27  ;;  %p3772_p10 = scmp.ne.s32.totalorder %s4403_s13, 0 }
  0x21   : > { %6275 = vst [vmem:[#allocation6_spill] sm:$0xff] %v6274_v27  ;;  %v315_v28 = vor.u32 %v314_v17, %v310_v14  ;;  %v320_v29 = vrot.slane %v318_v11, 5  ;;  %v493_v30 = vrot.slane %v491_v19, 4  ;;  %v496_v31 = vrot.slane %v494_v20, 5  ;;  %v4539_v32 = vld [vmem:[%s4483_s24 + $0x10] sm:$0xf] }
  0x22   : > { %v306_v33 = vrot.slane %v305_v22, 4  ;;  %v502_v34 = vrot.slane %v500_v23, 5  ;;  %v506_v35 = vrot.slane %v504_v24, 4  ;;  %v512_v36 = vrot.slane %v510_v25, 5  ;;  %v4546_v43 = vld [vmem:[%s4483_s24 + $0x14] sm:$0x1] }
  0x23   : > { %v316_v37 = vrot.slane %v315_v28, 4  ;;  %v497_v38 = vor.u32 %v496_v31, %v493_v30  ;;  %v323_v39 = vshrl.u32 %v4530_v26, 16  ;;  %v326_v40 = vshll.u32 %v4530_v26, 16  ;;  %v4551_v46 = vld [vmem:[%s4483_s24 + $0x6c] sm:$0xf] }
  0x24   : > { %v311_v41 = vsel %vm4534_vm5, %v306_v33, %v310_v14  ;;  %v507_v42 = vor.u32 %v506_v35, %v502_v34  ;;  %v332_v44 = vshll.u32 %v4539_v32, 16  ;;  %v336_v45 = vshrl.u32 %v4539_v32, 16  ;;  %6276 = vst [vmem:[#allocation7_spill] sm:$0xff] %v4551_v46  ;;  %v3629_v51 = vld [vmem:[%s6228_s1 + $0x4] sm:$0x3] }
  0x25   : > { %v321_v47 = vsel %vm4534_vm5, %v316_v37, %v320_v29  ;;  %v498_v48 = vrot.slane %v497_v38, 4  ;;  %v325_v49 = vrot.slane %v323_v39, 4  ;;  %v328_v50 = vrot.slane %v326_v40, 5  ;;  %4308 = vmatprep.subr.msk.bf16.mxu0 %vm781_vm1, %v3629_v51  ;;  %v4564_v60 = vld [vmem:[%s4483_s24 + $0x70] sm:$0xf] }
  0x26   : > { %v3549_v52 = vcombine.low %v311_v41, %v321_v47  ;;  %v508_v53 = vrot.slane %v507_v42, 4  ;;  %v334_v54 = vrot.slane %v332_v44, 5  ;;  %v338_v55 = vrot.slane %v336_v45, 4  ;;  %v4571_v0 = vld [vmem:[%s4483_s24 + $0x74] sm:$0x1] }
  0x27   : > { %v503_v56 = vsel %vm4534_vm5, %v498_v48, %v502_v34  ;;  %v329_v57 = vor.u32 %v328_v50, %v325_v49  ;;  %v342_v58 = vshll.u32 %v4546_v43, 16  ;;  %6277 = vst [vmem:[#allocation8_spill] sm:$0xff] %v4571_v0  ;;  %v515_v1 = vshrl.u32 %v4551_v46, 16  ;;  %v4578_v9 = vld [vmem:[%s4483_s24 + $0x18] sm:$0xf] }
  0x28   : > { %3999 = vmatprep.mubr.msk.bf16.mxu0 %vm732_vm4, %v3549_v52  ;;  %v513_v61 = vsel %vm4534_vm5, %v508_v53, %v512_v36  ;;  %v339_v62 = vor.u32 %v338_v55, %v334_v54  ;;  %v518_v8 = vshll.u32 %v4551_v46, 16  ;;  %v524_v13 = vshll.u32 %v4564_v60, 16  ;;  %v4583_v17 = vld [vmem:[%s4483_s24 + $0x1c] sm:$0xf]  ;;  %v4592_v24 = vld [vmem:[%s4483_s24 + $0x20] sm:$0x1] }
  0x29   : > { %v4574_v3 = vcombine.low %v503_v56, %v513_v61  ;;  %v330_v6 = vrot.slane %v329_v57, 4  ;;  %v344_v7 = vrot.slane %v342_v58, 5  ;;  %v517_v11 = vrot.slane %v515_v1, 4  ;;  %v4598_v31 = vld [vmem:[%s4483_s24 + $0x78] sm:$0xf] }
  0x2a   : > { %v340_v10 = vrot.slane %v339_v62, 4  ;;  %v528_v14 = vshrl.u32 %v4564_v60, 16  ;;  %v520_v20 = vrot.slane %v518_v8, 5  ;;  %v534_v22 = vshll.u32 %v4571_v0, 16  ;;  %6279 = vst [vmem:[#allocation10_spill] sm:$0xff] %v4598_v31 }
  0x2b   : > { %6278 = vst [vmem:[#allocation9_spill] sm:$0xff] %v4574_v3  ;;  %4015 = vmatprep.mubr.msk.bf16.mxu1 %vm732_vm4, %v4574_v3  ;;  %v335_v19 = vsel %vm4534_vm5, %v330_v6, %v334_v54  ;;  %v1075_v23 = vsel %vm781_vm1, %v294_v21, 0  ;;  %v526_v28 = vrot.slane %v524_v13, 5  ;;  %v1468_v30 = vsel %vm781_vm1, %v3629_v51, 0  ;;  %v4610_v44 = vld [vmem:[%s4483_s24 + $0x7c] sm:$0xf] }
  0x2c   : > { %v345_v25 = vsel %vm4534_vm5, %v340_v10, %v344_v7  ;;  %v530_v29 = vrot.slane %v528_v14, 4  ;;  %v521_v34 = vor.u32 %v520_v20, %v517_v11  ;;  %v536_v35 = vrot.slane %v534_v22, 5  ;;  %v4614_v51 = vld [vmem:[%s4483_s24 + $0x80] sm:$0x1]  ;;  %v4620_v56 = vld [vmem:[%s4483_s24 + $0x24] sm:$0xf] }
  0x2d   : > { %v4600_v33 = vcombine.low %v335_v19, %v345_v25  ;;  %v347_v36 = vshrl.u32 %v4578_v9, 16  ;;  %v350_v37 = vshll.u32 %v4578_v9, 16  ;;  %v356_v38 = vshll.u32 %v4583_v17, 16  ;;  %6281 = vst [vmem:[#allocation12_spill] sm:$0xff] %v4614_v51  ;;  %v4630_v10 = vld [vmem:[%s4483_s24 + $0x28] sm:$0xf] }
  0x2e   : > { %v531_v21 = vor.u32 %v530_v29, %v526_v28  ;;  %v360_v39 = vshrl.u32 %v4583_v17, 16  ;;  %v522_v40 = vrot.slane %v521_v34, 4  ;;  %v366_v42 = vshll.u32 %v4592_v24, 16  ;;  %v4633_v19 = vld [vmem:[%s4483_s24 + $0x2c] sm:$0x1] }
  0x2f   : > { %6280 = vst [vmem:[#allocation11_spill] sm:$0xff] %v4600_v33  ;;  %4000 = vmatmul.mubr.msk.bf16.vlgmr.msra.gmra.mxu0 %vm732_vm4, %v4600_v33  ;;  %v349_v41 = vrot.slane %v347_v36, 4  ;;  %v539_v45 = vshrl.u32 %v4598_v31, 16  ;;  %v352_v48 = vrot.slane %v350_v37, 5  ;;  %v358_v49 = vrot.slane %v356_v38, 5 }
  0x30   : > { %v532_v47 = vrot.slane %v531_v21, 4  ;;  %4066 = vmatpush3.bf16.msra.mxu0 %v1468_v30  ;;  %v362_v50 = vrot.slane %v360_v39, 4  ;;  %v527_v52 = vsel %vm4534_vm5, %v522_v40, %v526_v28  ;;  %v368_v53 = vrot.slane %v366_v42, 5  ;;  %v4640_v30 = vld [vmem:[%s4483_s24 + $0x84] sm:$0xf] }
  0x31   : > { %v541_v54 = vrot.slane %v539_v45, 4  ;;  %v542_v55 = vshll.u32 %v4598_v31, 16  ;;  %v353_v58 = vor.u32 %v352_v48, %v349_v41  ;;  %v548_v62 = vshll.u32 %v4610_v44, 16  ;;  %v4650_v41 = vld [vmem:[%s4483_s24 + $0x88] sm:$0xf] }
  0x32   : > { %v537_v57 = vsel %vm4534_vm5, %v532_v47, %v536_v35  ;;  %v363_v61 = vor.u32 %v362_v50, %v358_v49  ;;  %v552_v7 = vshrl.u32 %v4610_v44, 16  ;;  %v558_v8 = vshll.u32 %v4614_v51, 16 }
  0x33   : > { %v4625_v1 = vcombine.low %v527_v52, %v537_v57  ;;  %v544_v6 = vrot.slane %v542_v55, 5  ;;  %v354_v11 = vrot.slane %v353_v58, 4  ;;  %v550_v14 = vrot.slane %v548_v62, 5  ;;  %v4660_v52 = vld [vmem:[%s4483_s24 + $0x8c] sm:$0x1] }
  0x34   : > { %v364_v13 = vrot.slane %v363_v61, 4  ;;  %v371_v20 = vshrl.u32 %v4620_v56, 16  ;;  %v554_v25 = vrot.slane %v552_v7, 4  ;;  %v560_v28 = vrot.slane %v558_v8, 5  ;;  %v4665_v61 = vld [vmem:[%s4483_s24 + $0x30] sm:$0xf] }
  0x35   : > { %6282 = vst [vmem:[#allocation13_spill] sm:$0xff] %v4625_v1  ;;  %4016 = vmatmul.mubr.msk.bf16.vlgmr.msra.gmra.mxu1 %vm732_vm4, %v4625_v1  ;;  %v545_v22 = vor.u32 %v544_v6, %v541_v54  ;;  %v374_v29 = vshll.u32 %v4620_v56, 16  ;;  %v359_v34 = vsel %vm4534_vm5, %v354_v11, %v358_v49  ;;  %v380_v21 = vshll.u32 %v4630_v10, 16  ;;  %v4671_v11 = vld [vmem:[%s4483_s24 + $0x34] sm:$0xf] }
  0x36   : > { %4032 = vmatpush3.bf16.msra.mxu1 %v1075_v23  ;;  %v369_v35 = vsel %vm4534_vm5, %v364_v13, %v368_v53  ;;  %v373_v36 = vrot.slane %v371_v20, 4  ;;  %v555_v39 = vor.u32 %v554_v25, %v550_v14  ;;  %v384_v23 = vshrl.u32 %v4630_v10, 16 }
  0x37   : > { %v4647_v37 = vcombine.low %v359_v34, %v369_v35  ;;  %v546_v38 = vrot.slane %v545_v22, 4  ;;  %v376_v40 = vrot.slane %v374_v29, 5  ;;  %v382_v42 = vrot.slane %v380_v21, 5  ;;  %v4679_v35 = vld [vmem:[%s4483_s24 + $0x38] sm:$0x1] }
  0x38   : > { %v390_v45 = vshll.u32 %v4633_v19, 16  ;;  %v563_v47 = vshrl.u32 %v4640_v30, 16  ;;  %v556_v49 = vrot.slane %v555_v39, 4  ;;  %v566_v53 = vshll.u32 %v4640_v30, 16 }
  0x39   : > { %6283 = vst [vmem:[#allocation14_spill] sm:$0xff] %v4647_v37  ;;  %4003 = vmatprep.mubr.msk.bf16.mxu0 %vm732_vm4, %v4647_v37  ;;  %v551_v48 = vsel %vm4534_vm5, %v546_v38, %v550_v14  ;;  %v377_v50 = vor.u32 %v376_v40, %v373_v36  ;;  %v386_v54 = vrot.slane %v384_v23, 4  ;;  %v572_v58 = vshll.u32 %v4650_v41, 16 }
  0x3a   : > { %v392_v55 = vrot.slane %v390_v45, 5  ;;  %v565_v57 = vrot.slane %v563_v47, 4  ;;  %v561_v62 = vsel %vm4534_vm5, %v556_v49, %v560_v28  ;;  %v568_v7 = vrot.slane %v566_v53, 5  ;;  %v4688_v47 = vld [vmem:[%s4483_s24 + $0x90] sm:$0xf] }
  0x3b   : > { %v378_v6 = vrot.slane %v377_v50, 4  ;;  %v576_v8 = vshrl.u32 %v4650_v41, 16  ;;  %v4673_v13 = vcombine.low %v551_v48, %v561_v62  ;;  %v387_v14 = vor.u32 %v386_v54, %v382_v42  ;;  %v4694_v54 = vld [vmem:[%s4483_s24 + $0x94] sm:$0xf] }
  0x3c   : > { %v574_v20 = vrot.slane %v572_v58, 5  ;;  %v582_v22 = vshll.u32 %v4660_v52, 16  ;;  %v569_v29 = vor.u32 %v568_v7, %v565_v57  ;;  %v395_v28 = vshrl.u32 %v4665_v61, 16  ;;  %v4703_v7 = vld [vmem:[%s6228_s1 + $0x6] sm:$0x3] }
  0x3d   : > { %6284 = vst [vmem:[#allocation15_spill] sm:$0xff] %v4673_v13  ;;  %v383_v25 = vsel %vm4534_vm5, %v378_v6, %v382_v42  ;;  %v578_v34 = vrot.slane %v576_v8, 4  ;;  %4019 = vmatprep.mubr.msk.bf16.mxu1 %vm732_vm4, %v4673_v13  ;;  %v388_v36 = vrot.slane %v387_v14, 4  ;;  %v398_v38 = vshll.u32 %v4665_v61, 16  ;;  %4309 = vmatprep.subr.msk.bf16.mxu1 %vm781_vm1, %v4703_v7 }
  0x3e   : > { %v584_v21 = vrot.slane %v582_v22, 5  ;;  %v404_v39 = vshll.u32 %v4671_v11, 16  ;;  %v570_v40 = vrot.slane %v569_v29, 4  ;;  %v397_v45 = vrot.slane %v395_v28, 4  ;;  %v4711_v22 = vld [vmem:[%s4483_s24 + $0x98] sm:$0x1] }
  0x3f   : > { %v579_v23 = vor.u32 %v578_v34, %v574_v20  ;;  %v408_v42 = vshrl.u32 %v4671_v11, 16  ;;  %v393_v48 = vsel %vm4534_vm5, %v388_v36, %v392_v55  ;;  %v400_v49 = vrot.slane %v398_v38, 5  ;;  %v4708_v55 = vld [vmem:[%s6228_s1 + $0x8] sm:$0x3]  ;;  %v4726_v38 = vld [vmem:[%s4483_s24 + $0x3c] sm:$0xf] }
  0x40   : > { %v406_v50 = vrot.slane %v404_v39, 5  ;;  %v414_v53 = vshll.u32 %v4679_v35, 16  ;;  %v4696_v57 = vcombine.low %v383_v25, %v393_v48  ;;  %v575_v58 = vsel %vm4534_vm5, %v570_v40, %v574_v20  ;;  %4310 = vmatprep.subr.msk.bf16.mxu0 %vm781_vm1, %v4708_v55 }
  0x41   : > { %v580_v62 = vrot.slane %v579_v23, 4  ;;  %v410_v6 = vrot.slane %v408_v42, 4  ;;  %v401_v8 = vor.u32 %v400_v49, %v397_v45  ;;  %v587_v20 = vshrl.u32 %v4688_v47, 16  ;;  %v4731_v42 = vld [vmem:[%s4483_s24 + $0x40] sm:$0xf] }
  0x42   : > { %6285 = vst [vmem:[#allocation16_spill] sm:$0xff] %v4696_v57  ;;  %v416_v14 = vrot.slane %v414_v53, 5  ;;  %v590_v25 = vshll.u32 %v4688_v47, 16  ;;  %4004 = vmatmul.mubr.msk.bf16.gmra.mxu0 %vm732_vm4, %v4696_v57  ;;  %v596_v28 = vshll.u32 %v4694_v54, 16  ;;  %v600_v36 = vshrl.u32 %v4694_v54, 16 }
  0x43   : > { %v585_v29 = vsel %vm4534_vm5, %v580_v62, %v584_v21  ;;  %v411_v34 = vor.u32 %v410_v6, %v406_v50  ;;  %v402_v40 = vrot.slane %v401_v8, 4  ;;  %v589_v23 = vrot.slane %v587_v20, 4  ;;  %v4739_v6 = vld [vmem:[%s4483_s24 + $0x44] sm:$0x1] }
  0x44   : > { %v4728_v39 = vcombine.low %v575_v58, %v585_v29  ;;  %v592_v45 = vrot.slane %v590_v25, 5  ;;  %v598_v49 = vrot.slane %v596_v28, 5  ;;  %v602_v53 = vrot.slane %v600_v36, 4  ;;  %v4747_v36 = vld [vmem:[%s4483_s24 + $0x9c] sm:$0xf] }
  0x45   : > { %v412_v48 = vrot.slane %v411_v34, 4  ;;  %v606_v21 = vshll.u32 %v4711_v22, 16  ;;  %v407_v62 = vsel %vm4534_vm5, %v402_v40, %v406_v50  ;;  %v419_v8 = vshrl.u32 %v4726_v38, 16  ;;  %6287 = vst [vmem:[#allocation18_spill] sm:$0xff] %v4747_v36 }
  0x46   : > { %6286 = vst [vmem:[#allocation17_spill] sm:$0xff] %v4728_v39  ;;  %4020 = vmatmul.mubr.msk.bf16.gmra.mxu1 %vm732_vm4, %v4728_v39  ;;  %v593_v58 = vor.u32 %v592_v45, %v589_v23  ;;  %v422_v20 = vshll.u32 %v4726_v38, 16  ;;  %v603_v29 = vor.u32 %v602_v53, %v598_v49  ;;  %v428_v28 = vshll.u32 %v4731_v42, 16  ;;  %v4752_v45 = vld [vmem:[%s4483_s24 + $0xa0] sm:$0xf] }
  0x47   : > { %v417_v25 = vsel %vm4534_vm5, %v412_v48, %v416_v14  ;;  %v608_v34 = vrot.slane %v606_v21, 5  ;;  %v421_v40 = vrot.slane %v419_v8, 4  ;;  %v432_v39 = vshrl.u32 %v4731_v42, 16  ;;  %v4761_v21 = vld [vmem:[%s4483_s24 + $0xa4] sm:$0x1] }
  0x48   : > { %v4749_v18 = vcombine.low %v407_v62, %v417_v25  ;;  %v594_v50 = vrot.slane %v593_v58, 4  ;;  %v424_v23 = vrot.slane %v422_v20, 5  ;;  %v604_v63 = vrot.slane %v603_v29, 4  ;;  %6289 = vst [vmem:[#allocation20_spill] sm:$0xff] %v4761_v21 }
  0x49   : > { %v430_v59 = vrot.slane %v428_v28, 5  ;;  %v438_v14 = vshll.u32 %v4739_v6, 16  ;;  %v611_v62 = vshrl.u32 %v4747_v36, 16  ;;  %v614_v58 = vshll.u32 %v4747_v36, 16  ;;  %v4769_v28 = vld [vmem:[%s4483_s24 + $0x48] sm:$0xf] }
  0x4a   : > { %6288 = vst [vmem:[#allocation19_spill] sm:$0xff] %v4749_v18  ;;  %4007 = vmatprep.mubr.msk.bf16.mxu0 %vm732_vm4, %v4749_v18  ;;  %v599_v48 = vsel %vm4534_vm5, %v594_v50, %v598_v49  ;;  %v425_v53 = vor.u32 %v424_v23, %v421_v40  ;;  %v609_v8 = vsel %vm4534_vm5, %v604_v63, %v608_v34  ;;  %v434_v20 = vrot.slane %v432_v39, 4  ;;  %v4774_v23 = vld [vmem:[%s4483_s24 + $0x4c] sm:$0xf] }
  0x4b   : > { %v440_v25 = vrot.slane %v438_v14, 5  ;;  %v620_v29 = vshll.u32 %v4752_v45, 16  ;;  %v4771_v13 = vcombine.low %v599_v48, %v609_v8  ;;  %v613_v50 = vrot.slane %v611_v62, 4  ;;  %v4783_v14 = vld [vmem:[%s4483_s24 + $0x50] sm:$0x1] }
  0x4c   : > { %v426_v49 = vrot.slane %v425_v53, 4  ;;  %v616_v40 = vrot.slane %v614_v58, 5  ;;  %v435_v1 = vor.u32 %v434_v20, %v430_v59  ;;  %v624_v18 = vshrl.u32 %v4752_v45, 16 }
  0x4d   : > { %6290 = vst [vmem:[#allocation21_spill] sm:$0xff] %v4771_v13  ;;  %v622_v3 = vrot.slane %v620_v29, 5  ;;  %v630_v63 = vshll.u32 %v4761_v21, 16  ;;  %4023 = vmatprep.mubr.msk.bf16.mxu1 %vm732_vm4, %v4771_v13  ;;  %v443_v48 = vshrl.u32 %v4769_v28, 16  ;;  %v446_v53 = vshll.u32 %v4769_v28, 16 }
  0x4e   : > { %v431_v39 = vsel %vm4534_vm5, %v426_v49, %v430_v59  ;;  %v617_v34 = vor.u32 %v616_v40, %v613_v50  ;;  %v436_v62 = vrot.slane %v435_v1, 4  ;;  %v626_v58 = vrot.slane %v624_v18, 4  ;;  %v4790_v59 = vld [vmem:[%s4483_s24 + $0xa8] sm:$0xf]  ;;  %v4796_v18 = vld [vmem:[%s4483_s24 + $0xac] sm:$0xf] }
  0x4f   : > { %v632_v8 = vrot.slane %v630_v63, 5  ;;  %v452_v20 = vshll.u32 %v4774_v23, 16  ;;  %v445_v57 = vrot.slane %v443_v48, 4  ;;  %v448_v13 = vrot.slane %v446_v53, 5  ;;  %6291 = vst [vmem:[#allocation22_spill] sm:$0xff] %v4790_v59  ;;  %6292 = vst [vmem:[#allocation23_spill] sm:$0xff] %v4796_v18 }
  0x50   : > { %v618_v29 = vrot.slane %v617_v34, 4  ;;  %v456_v37 = vshrl.u32 %v4774_v23, 16  ;;  %v441_v49 = vsel %vm4534_vm5, %v436_v62, %v440_v25  ;;  %v627_v50 = vor.u32 %v626_v58, %v622_v3  ;;  %v4803_v53 = vld [vmem:[%s4483_s24 + $0xb0] sm:$0x1] }
  0x51   : > { %v454_v40 = vrot.slane %v452_v20, 5  ;;  %v462_v33 = vshll.u32 %v4783_v14, 16  ;;  %v4798_v1 = vcombine.low %v431_v39, %v441_v49  ;;  %v449_v34 = vor.u32 %v448_v13, %v445_v57  ;;  %6294 = vst [vmem:[#allocation25_spill] sm:$0xff] %v4803_v53  ;;  %v4818_v49 = vld [vmem:[%s4483_s24 + $0x58] sm:$0xf] }
  0x52   : > { %v623_v63 = vsel %vm4534_vm5, %v618_v29, %v622_v3  ;;  %v458_v48 = vrot.slane %v456_v37, 4  ;;  %v628_v51 = vrot.slane %v627_v50, 4  ;;  %v635_v25 = vshrl.u32 %v4790_v59, 16  ;;  %v4812_v37 = vld [vmem:[%s4483_s24 + $0x54] sm:$0xf] }
  0x53   : > { %6293 = vst [vmem:[#allocation24_spill] sm:$0xff] %v4798_v1  ;;  %v464_v31 = vrot.slane %v462_v33, 5  ;;  %v638_v62 = vshll.u32 %v4790_v59, 16  ;;  %4008 = vmatmul.mubr.msk.bf16.gmra.mxu0 %vm732_vm4, %v4798_v1  ;;  %v450_v58 = vrot.slane %v449_v34, 4  ;;  %v644_v20 = vshll.u32 %v4796_v18, 16 }
  0x54   : > { %v459_v39 = vor.u32 %v458_v48, %v454_v40  ;;  %v648_v3 = vshrl.u32 %v4796_v18, 16  ;;  %v633_v13 = vsel %vm4534_vm5, %v628_v51, %v632_v8  ;;  %v637_v33 = vrot.slane %v635_v25, 4  ;;  %v4825_v18 = vld [vmem:[%s4483_s24 + $0x5c] sm:$0x1] }
  0x55   : > { %v640_v57 = vrot.slane %v638_v62, 5  ;;  %v654_v29 = vshll.u32 %v4803_v53, 16  ;;  %v4820_v50 = vcombine.low %v623_v63, %v633_v13  ;;  %v455_v34 = vsel %vm4534_vm5, %v450_v58, %v454_v40  ;;  %v4836_v62 = vld [vmem:[%s4483_s24 + $0xb4] sm:$0xf]  ;;  %v4841_v13 = vld [vmem:[%s4483_s24 + $0xb8] sm:$0xf] }
  0x56   : > { %v460_v48 = vrot.slane %v459_v39, 4  ;;  %v646_v1 = vrot.slane %v644_v20, 5  ;;  %v650_v46 = vrot.slane %v648_v3, 4  ;;  %v467_v51 = vshrl.u32 %v4812_v37, 16  ;;  %6296 = vst [vmem:[#allocation27_spill] sm:$0xff] %v4836_v62 }
  0x57   : > { %6295 = vst [vmem:[#allocation26_spill] sm:$0xff] %v4820_v50  ;;  %v641_v0 = vor.u32 %v640_v57, %v637_v33  ;;  %v656_v59 = vrot.slane %v654_v29, 5  ;;  %4024 = vmatmul.mubr.msk.bf16.gmra.mxu1 %vm732_vm4, %v4820_v50  ;;  %v470_v63 = vshll.u32 %v4812_v37, 16  ;;  %v476_v40 = vshll.u32 %v4818_v49, 16  ;;  %v4851_v53 = vld [vmem:[%s4483_s24 + $0xbc] sm:$0x1] }
  0x58   : > { %v465_v8 = vsel %vm4534_vm5, %v460_v48, %v464_v31  ;;  %v480_v25 = vshrl.u32 %v4818_v49, 16  ;;  %v651_v20 = vor.u32 %v650_v46, %v646_v1  ;;  %v469_v3 = vrot.slane %v467_v51, 4 }
  0x59   : > { %v4838_v58 = vcombine.low %v455_v34, %v465_v8  ;;  %v642_v39 = vrot.slane %v641_v0, 4  ;;  %v472_v33 = vrot.slane %v470_v63, 5  ;;  %v478_v57 = vrot.slane %v476_v40, 5 }
  0x5a   : > { %v482_v29 = vrot.slane %v480_v25, 4  ;;  %v486_v31 = vshll.u32 %v4825_v18, 16  ;;  %v652_v50 = vrot.slane %v651_v20, 4  ;;  %v659_v34 = vshrl.u32 %v4836_v62, 16 }
  0x5b   : > { %6297 = vst [vmem:[#allocation28_spill] sm:$0xff] %v4838_v58  ;;  %4011 = vmatprep.mubr.msk.bf16.mxu0 %vm732_vm4, %v4838_v58  ;;  %v647_v48 = vsel %vm4534_vm5, %v642_v39, %v646_v1  ;;  %v662_v0 = vshll.u32 %v4836_v62, 16  ;;  %v473_v46 = vor.u32 %v472_v33, %v469_v3  ;;  %v668_v63 = vshll.u32 %v4841_v13, 16 }
  0x5c   : > { %v483_v51 = vor.u32 %v482_v29, %v478_v57  ;;  %v488_v8 = vrot.slane %v486_v31, 5  ;;  %v657_v40 = vsel %vm4534_vm5, %v652_v50, %v656_v59  ;;  %v661_v25 = vrot.slane %v659_v34, 4 }
  0x5d   : > { %v664_v58 = vrot.slane %v662_v0, 5  ;;  %v672_v21 = vshrl.u32 %v4841_v13, 16  ;;  %v4857_v1 = vcombine.low %v647_v48, %v657_v40  ;;  %v474_v39 = vrot.slane %v473_v46, 4 }
  0x5e   : > { %v484_v20 = vrot.slane %v483_v51, 4  ;;  %v670_v36 = vrot.slane %v668_v63, 5  ;;  %v678_v33 = vshll.u32 %v4851_v53, 16  ;;  %vm1254_vm6 = vcmask 1042432  }
  0x5f   : > { %v665_v62 = vor.u32 %v664_v58, %v661_v25  ;;  %v674_v3 = vrot.slane %v672_v21, 4  ;;  %4027 = vmatprep.mubr.msk.bf16.mxu1 %vm732_vm4, %v4857_v1  ;;  %v479_v59 = vsel %vm4534_vm5, %v474_v39, %v478_v57  ;;  %vm1255_vm7 = vcmask 1046532  }
  0x60   : > { %v489_v50 = vsel %vm4534_vm5, %v484_v20, %v488_v8  ;;  %v3613_v29 = vrot.slane %v4494_v2, 9  ;;  %v680_v21 = vrot.slane %v678_v33, 5  ;;  %vm4869_vm8 = vmor %vm1254_vm6, %vm1255_vm7  ;;  %v1259_v0 = vrot.slane %v4500_v4, 5 }
  0x61   : > { %v4867_v31 = vcombine.low %v479_v59, %v489_v50  ;;  %v666_v48 = vrot.slane %v665_v62, 4  ;;  %v675_v58 = vor.u32 %v674_v3, %v670_v36  ;;  %v4876_v57 = vcombine.low %v4530_v26, %v4539_v32 }
  0x62   : > { %v3614_v46 = vrot.slane %v4530_v26, 9  ;;  %v6300_v51 = vrot.slane %v4539_v32, 5  ;;  %v3581_v40 = vcombine.low %v4494_v2, %v4500_v4  ;;  %v1260_v25 = vsel %vm4869_vm8, %v3613_v29, %v1259_v0 }
  0x63   : > { %4012 = vmatmul.mubr.msk.bf16.gmra.mxu0 %vm732_vm4, %v4867_v31  ;;  %v671_v62 = vsel %vm4534_vm5, %v666_v48, %v670_v36  ;;  %v676_v63 = vrot.slane %v675_v58, 4  ;;  %v1261_v39 = vrot.slane %v1259_v0, 4  ;;  %v6302_v3 = vrot.slane %v4546_v43, 5 }
  0x64   : > { %v1268_v8 = vrot.slane %v6300_v51, 4  ;;  %v6301_v20 = vmov %v6300_v51  ;;  %v4903_v2 = vcombine.low %v4578_v9, %v4583_v17  ;;  %v3615_v4 = vrot.slane %v4578_v9, 9 }
  0x65   : > { %v1267_v26 = vsel %vm4869_vm8, %v3614_v46, %v6301_v20  ;;  %v681_v36 = vsel %vm4534_vm5, %v676_v63, %v680_v21  ;;  %v6303_v50 = vrot.slane %v4503_v5, 5  ;;  %v1273_v29 = vrot.slane %v4583_v17, 5 }
  0x66   : > { %v1270_v33 = vsel %vm4869_vm8, %v1268_v8, %v6302_v3  ;;  %v4906_v32 = vcombine.low %v671_v62, %v681_v36  ;;  %v1276_v48 = vrot.slane %v4592_v24, 5  ;;  %v1280_v21 = vrot.slane %v4630_v10, 5 }
  0x67   : > { %v4899_v59 = vcombine.low %v1267_v26, %v1270_v33  ;;  %v1263_v43 = vsel %vm4869_vm8, %v1261_v39, %v6303_v50  ;;  %v1274_v9 = vsel %vm4869_vm8, %v3615_v4, %v1273_v29  ;;  %v1275_v0 = vrot.slane %v1273_v29, 4 }
  0x68   : > { %v3630_v58 = vcombine.low %v1260_v25, %v1263_v43  ;;  %4028 = vmatmul.mubr.msk.bf16.gmra.mxu1 %vm732_vm4, %v4906_v32  ;;  %v3616_v46 = vrot.slane %v4620_v56, 9  ;;  %v1283_v5 = vrot.slane %v4633_v19, 5  ;;  %v1902_v17 = vsel %vm781_vm1, %v4708_v55, 0  ;;  %v4933_v19 = vld [vmem:[%s6228_s1 + $0xc] sm:$0x3] }
  0x69   : > { %4033 = vmatprep.mubr.msk.bf16.mxu1 %vm732_vm4, %v3581_v40  ;;  %v1282_v24 = vrot.slane %v1280_v21, 4  ;;  %v3617_v51 = vrot.slane %v4665_v61, 9  ;;  %v1287_v8 = vrot.slane %v4671_v11, 5  ;;  %v1277_v62 = vsel %vm4869_vm8, %v1275_v0, %v1276_v48  ;;  %v4963_v48 = vld [vmem:[%s6228_s1 + $0xa] sm:$0x3] }
  0x6a   : > { %4067 = vmatprep.mubr.msk.bf16.mxu0 %vm732_vm4, %v3630_v58  ;;  %v1290_v63 = vrot.slane %v4679_v35, 5  ;;  %v4937_v40 = vcombine.low %v1274_v9, %v1277_v62  ;;  %v1281_v25 = vsel %vm4869_vm8, %v3616_v46, %v1280_v21  ;;  %v1294_v35 = vrot.slane %v4731_v42, 5 }
  0x6b   : > { %4068 = vmatmul.mubr.msk.bf16.vlgmr.msra.gmra.mxu0 %vm732_vm4, %v4899_v59  ;;  %v1289_v55 = vrot.slane %v1287_v8, 4  ;;  %v1284_v39 = vsel %vm4869_vm8, %v1282_v24, %v1283_v5  ;;  %v1288_v20 = vsel %vm4869_vm8, %v3617_v51, %v1287_v8  ;;  %v1301_v3 = vrot.slane %v4774_v23, 5 }
  0x6c   : > { %4134 = vmatpush3.bf16.msra.mxu0 %v1902_v17  ;;  %4071 = vmatprep.mubr.msk.bf16.mxu0 %vm732_vm4, %v4937_v40  ;;  %v1674_v33 = vsel %vm781_vm1, %v4703_v7, 0  ;;  %v3618_v36 = vrot.slane %v4726_v38, 9  ;;  %v1296_v4 = vrot.slane %v1294_v35, 4  ;;  %v1297_v50 = vrot.slane %v4739_v6, 5 }
  0x6d   : > { %v1291_v26 = vsel %vm4869_vm8, %v1289_v55, %v1290_v63  ;;  %4312 = vmatprep.subr.msk.bf16.mxu0 %vm781_vm1, %v4933_v19  ;;  %v4957_v43 = vcombine.low %v1281_v25, %v1284_v39  ;;  %v1308_v29 = vrot.slane %v4818_v49, 5  ;;  %v3619_v7 = vrot.slane %v4769_v28, 9 }
  0x6e   : > { %v4967_v58 = vcombine.low %v1288_v20, %v1291_v26  ;;  %v1303_v21 = vrot.slane %v1301_v3, 4  ;;  %v1304_v9 = vrot.slane %v4783_v14, 5  ;;  %v1295_v6 = vsel %vm4869_vm8, %v3618_v36, %v1294_v35 }
  0x6f   : > { %v1298_v0 = vsel %vm4869_vm8, %v1296_v4, %v1297_v50  ;;  %v1315_v46 = vrot.slane %v4514_v15, 5  ;;  %v1318_v5 = vrot.slane %v4517_v16, 5  ;;  %v3620_v14 = vrot.slane %v4812_v37, 9  ;;  %v6304_v50 = vld [vmem:[#allocation18_spill] sm:$0xff] }
  0x70   : > { %4034 = vmatmul.mubr.msk.bf16.vlgmr.msra.gmra.mxu1 %vm732_vm4, %v4876_v57  ;;  %v1310_v17 = vrot.slane %v1308_v29, 4  ;;  %v1311_v24 = vrot.slane %v4825_v18, 5  ;;  %v4987_v51 = vcombine.low %v4620_v56, %v4630_v10  ;;  %v1302_v8 = vsel %vm4869_vm8, %v3619_v7, %v1301_v3 }
  0x71   : > { %4100 = vmatpush3.bf16.msra.mxu1 %v1674_v33  ;;  %4037 = vmatprep.mubr.msk.bf16.mxu1 %vm732_vm4, %v4903_v2  ;;  %v1305_v16 = vsel %vm4869_vm8, %v1303_v21, %v1304_v9  ;;  %v3621_v62 = vrot.slane %v4511_v12, 9  ;;  %v4998_v63 = vcombine.low %v4665_v61, %v4671_v11  ;;  %v5002_v18 = vcombine.low %v4726_v38, %v4731_v42  ;;  %v6305_v9 = vld [vmem:[#allocation20_spill] sm:$0xff] }
  0x72   : > { %4311 = vmatprep.subr.msk.bf16.mxu1 %vm781_vm1, %v4963_v48  ;;  %v5004_v56 = vcombine.low %v1295_v6, %v1298_v0  ;;  %v5008_v10 = vcombine.low %v4769_v28, %v4774_v23  ;;  %v1317_v55 = vrot.slane %v1315_v46, 4  ;;  %v5012_v25 = vcombine.low %v4640_v30, %v4650_v41  ;;  %v6306_v0 = vld [vmem:[#allocation23_spill] sm:$0xff] }
  0x73   : > { %4072 = vmatmul.mubr.msk.bf16.gmra.mxu0 %vm732_vm4, %v4957_v43  ;;  %v3624_v39 = vrot.slane %v4640_v30, 9  ;;  %v1336_v61 = vrot.slane %v4650_v41, 5  ;;  %v5016_v11 = vcombine.low %v1302_v8, %v1305_v16  ;;  %v1309_v38 = vsel %vm4869_vm8, %v3620_v14, %v1308_v29  ;;  %v6308_v8 = vld [vmem:[#allocation25_spill] sm:$0xff] }
  0x74   : > { %4075 = vmatprep.mubr.msk.bf16.mxu0 %vm732_vm4, %v4967_v58  ;;  %v1312_v42 = vsel %vm4869_vm8, %v1310_v17, %v1311_v24  ;;  %v1322_v28 = vrot.slane %v4564_v60, 5  ;;  %v1316_v23 = vsel %vm4869_vm8, %v3621_v62, %v1315_v46  ;;  %v1339_v35 = vrot.slane %v4660_v52, 5  ;;  %v6307_v46 = vld [vmem:[#allocation22_spill] sm:$0xff]  ;;  %v6309_v62 = vld [vmem:[#allocation27_spill] sm:$0xff] }
  0x75   : > { %v1337_v30 = vsel %vm4869_vm8, %v3624_v39, %v1336_v61  ;;  %v1338_v41 = vrot.slane %v1336_v61, 4  ;;  %v1329_v20 = vrot.slane %v4610_v44, 5  ;;  %v5035_v26 = vcombine.low %v4688_v47, %v4694_v54 }
  0x76   : > { %v3625_v3 = vrot.slane %v4688_v47, 9  ;;  %v1343_v33 = vrot.slane %v4694_v54, 5  ;;  %v1319_v36 = vsel %vm4869_vm8, %v1317_v55, %v1318_v5  ;;  %v1346_v52 = vrot.slane %v4711_v22, 5 }
  0x77   : > { %v1340_v4 = vsel %vm4869_vm8, %v1338_v41, %v1339_v35  ;;  %v5046_v29 = vcombine.low %v6304_v50, %v4752_v45  ;;  %v3626_v21 = vrot.slane %v6304_v50, 9  ;;  %v1350_v22 = vrot.slane %v4752_v45, 5  ;;  %v6310_v45 = vld [vmem:[#allocation7_spill] sm:$0xff] }
  0x78   : > { %4038 = vmatmul.mubr.msk.bf16.gmra.mxu1 %vm732_vm4, %v4987_v51  ;;  %v5050_v7 = vcombine.low %v1337_v30, %v1340_v4  ;;  %v1344_v47 = vsel %vm4869_vm8, %v3625_v3, %v1343_v33  ;;  %v1345_v54 = vrot.slane %v1343_v33, 4  ;;  %v1353_v6 = vrot.slane %v6305_v9, 5  ;;  %v6311_v3 = vld [vmem:[#allocation8_spill] sm:$0xff] }
  0x79   : > { %4041 = vmatprep.mubr.msk.bf16.mxu1 %vm732_vm4, %v4998_v63  ;;  %v5061_v5 = vcombine.low %v6307_v46, %v6306_v0  ;;  %v3627_v14 = vrot.slane %v6307_v46, 9  ;;  %v1357_v24 = vrot.slane %v6306_v0, 5  ;;  %v1360_v16 = vrot.slane %v6308_v8, 5 }
  0x7a   : > { %v1347_v17 = vsel %vm4869_vm8, %v1345_v54, %v1346_v52  ;;  %v5070_v55 = vcombine.low %v6309_v62, %v4841_v13  ;;  %v3622_v39 = vrot.slane %v6310_v45, 9  ;;  %v1351_v30 = vsel %vm4869_vm8, %v3626_v21, %v1350_v22 }
  0x7b   : > { %4076 = vmatmul.mubr.msk.bf16.gmra.mxu0 %vm732_vm4, %v5004_v56  ;;  %v5073_v61 = vcombine.low %v1344_v47, %v1347_v17  ;;  %v1352_v41 = vrot.slane %v1350_v22, 4  ;;  %v5077_v35 = vcombine.low %v1309_v38, %v1312_v42  ;;  %v1325_v33 = vrot.slane %v6311_v3, 5  ;;  %v6312_v47 = vld [vmem:[#allocation10_spill] sm:$0xff]  ;;  %v6313_v42 = vld [vmem:[#allocation12_spill] sm:$0xff] }
  0x7c   : > { %4079 = vmatprep.mubr.msk.bf16.mxu0 %vm732_vm4, %v5016_v11  ;;  %v1358_v4 = vsel %vm4869_vm8, %v3627_v14, %v1357_v24  ;;  %v1359_v52 = vrot.slane %v1357_v24, 4  ;;  %v5084_v50 = vcombine.low %v1316_v23, %v1319_v36  ;;  %v1324_v54 = vrot.slane %v1322_v28, 4 }
  0x7d   : > { %v3623_v9 = vrot.slane %v6312_v47, 9  ;;  %v1354_v21 = vsel %vm4869_vm8, %v1352_v41, %v1353_v6  ;;  %v1331_v38 = vrot.slane %v1329_v20, 4  ;;  %v1332_v22 = vrot.slane %v6313_v42, 5  ;;  %v6316_v42 = vld [vmem:[#allocation16_spill] sm:$0xff] }
  0x7e   : > { %v5092_v0 = vcombine.low %v1351_v30, %v1354_v21  ;;  %v1361_v46 = vsel %vm4869_vm8, %v1359_v52, %v1360_v16  ;;  %v5102_v23 = vcombine.low %v4812_v37, %v4818_v49  ;;  %v1323_v36 = vsel %vm4869_vm8, %v3622_v39, %v1322_v28  ;;  %v5172_v39 = vld [vmem:[%s4483_s24 + $0xc0] sm:$0xf]  ;;  %v290_v30 = vld [vmem:[%s4483_s24 + $0xc8] sm:$0x1]  ;;  %v3754_v21 = vld [vmem:[%s6228_s1 + $0x10] sm:$0x3] }
  0x7f   : > { %v5096_v14 = vcombine.low %v1358_v4, %v1361_v46  ;;  %v1326_v6 = vsel %vm4869_vm8, %v1324_v54, %v1325_v33  ;;  %v5112_v17 = vcombine.low %v4511_v12, %v4514_v15  ;;  %v1330_v24 = vsel %vm4869_vm8, %v3623_v9, %v1329_v20  ;;  %v6314_v4 = vld [vmem:[#allocation11_spill] sm:$0xff]  ;;  %v6318_v46 = vld [vmem:[#allocation24_spill] sm:$0xff] }
  0x80   : > { %4042 = vmatmul.mubr.msk.bf16.gmra.mxu1 %vm732_vm4, %v5002_v18  ;;  %v1333_v37 = vsel %vm4869_vm8, %v1331_v38, %v1332_v22  ;;  %v5118_v49 = vcombine.low %v1323_v36, %v1326_v6  ;;  %v5130_v12 = vcombine.low %v6310_v45, %v4564_v60  ;;  %v5136_v15 = vcombine.low %v6312_v47, %v4610_v44  ;;  %v6315_v38 = vld [vmem:[#allocation14_spill] sm:$0xff]  ;;  %v6320_v36 = vld [vmem:[#allocation9_spill] sm:$0xff] }
  0x81   : > { %4045 = vmatprep.mubr.msk.bf16.mxu1 %vm732_vm4, %v5008_v10  ;;  %v5122_v8 = vcombine.low %v1330_v24, %v1333_v37  ;;  %v1364_v60 = vrot.slane %v4841_v13, 5  ;;  %v3628_v44 = vrot.slane %v6309_v62, 9  ;;  %v1367_v20 = vrot.slane %v4851_v53, 5  ;;  %v5166_v53 = vld [vmem:[%s4483_s24 + $0xc4] sm:$0xf]  ;;  %v6321_v6 = vld [vmem:[#allocation13_spill] sm:$0xff] }
  0x82   : > { %v2100_v62 = vrot.slane %v5166_v53, 5  ;;  %v3698_v41 = vrot.slane %v5172_v39, 9  ;;  %v2103_v33 = vrot.slane %v290_v30, 5  ;;  %v2320_v9 = vsel %vm781_vm1, %v4933_v19, 0  ;;  %v6317_v19 = vld [vmem:[#allocation19_spill] sm:$0xff]  ;;  %v6323_v37 = vld [vmem:[#allocation17_spill] sm:$0xff] }
  0x83   : > { %4080 = vmatmul.mubr.msk.bf16.gmra.mxu0 %vm732_vm4, %v5077_v35  ;;  %v1366_v28 = vrot.slane %v1364_v60, 4  ;;  %v1365_v13 = vsel %vm4869_vm8, %v3628_v44, %v1364_v60  ;;  %v2114_v22 = vsel %vm781_vm1, %v4963_v48, 0  ;;  %v6319_v48 = vld [vmem:[#allocation28_spill] sm:$0xff]  ;;  %v6322_v24 = vld [vmem:[#allocation15_spill] sm:$0xff]  ;;  %v1870_v60 = vshrl.u32 %v5172_v39, 16 }
  0x84   : > { %4083 = vmatprep.mubr.msk.bf16.mxu0 %vm732_vm4, %v5084_v50  ;;  %v2102_v3 = vrot.slane %v2100_v62, 4  ;;  %v2101_v52 = vsel %vm4869_vm8, %v3698_v41, %v2100_v62  ;;  %v1873_v44 = vshll.u32 %v5172_v39, 16 }
  0x85   : > { %v1368_v16 = vsel %vm4869_vm8, %v1366_v28, %v1367_v20  ;;  %v1883_v28 = vshrl.u32 %v5166_v53, 16  ;;  %v1879_v20 = vshll.u32 %v5166_v53, 16 }
  0x86   : > { %v5161_v45 = vcombine.low %v1365_v13, %v1368_v16  ;;  %v2104_v54 = vsel %vm4869_vm8, %v2102_v3, %v2103_v33  ;;  %v1872_v13 = vrot.slane %v1870_v60, 4  ;;  %v1875_v16 = vrot.slane %v1873_v44, 5  ;;  %v6324_v3 = vld [vmem:[#allocation21_spill] sm:$0xff]  ;;  %v6325_v33 = vld [vmem:[#allocation26_spill] sm:$0xff] }
  0x87   : > { %v5184_v47 = vcombine.low %v2101_v52, %v2104_v54  ;;  %v1881_v62 = vrot.slane %v1879_v20, 5  ;;  %v1885_v41 = vrot.slane %v1883_v28, 4  ;;  %v1889_v54 = vshll.u32 %v290_v30, 16 }
  0x88   : > { %4046 = vmatmul.mubr.msk.bf16.gmra.mxu1 %vm732_vm4, %v5102_v23  ;;  %v3663_v20 = vcombine.low %v5172_v39, %v5166_v53 }
  0x89   : > { %4049 = vmatprep.mubr.msk.bf16.mxu1 %vm732_vm4, %v5112_v17  ;;  %v1886_v52 = vor.u32 %v1885_v41, %v1881_v62  ;;  %v1891_v60 = vrot.slane %v1889_v54, 5  ;;  %v5376_v54 = vld [vmem:[%s4483_s24 + $0xd0] sm:$0xf] }
  0x8b   : > { %4084 = vmatmul.mubr.msk.bf16.gmra.mxu0 %vm732_vm4, %v5118_v49 }
  0x8c   : > { %4087 = vmatprep.mubr.msk.bf16.mxu0 %vm732_vm4, %v5122_v8 }
  0x90   : > { %4050 = vmatmul.mubr.msk.bf16.gmra.mxu1 %vm732_vm4, %v5130_v12 }
  0x91   : > { %4053 = vmatprep.mubr.msk.bf16.mxu1 %vm732_vm4, %v5136_v15 }
  0x93   : > { %4088 = vmatmul.mubr.msk.bf16.gmra.mxu0 %vm732_vm4, %v5050_v7 }
  0x94   : > { %4091 = vmatprep.mubr.msk.bf16.mxu0 %vm732_vm4, %v5073_v61 }
  0x98   : > { %4054 = vmatmul.mubr.msk.bf16.gmra.mxu1 %vm732_vm4, %v5012_v25 }
  0x99   : > { %4057 = vmatprep.mubr.msk.bf16.mxu1 %vm732_vm4, %v5035_v26 }
  0x9b   : > { %4092 = vmatmul.mubr.msk.bf16.gmra.mxu0 %vm732_vm4, %v5092_v0 }
  0x9c   : > { %4095 = vmatprep.mubr.msk.bf16.mxu0 %vm732_vm4, %v5096_v14 }
  0xa0   : > { %4058 = vmatmul.mubr.msk.bf16.gmra.mxu1 %vm732_vm4, %v5046_v29 }
  0xa1   : > { %4061 = vmatprep.mubr.msk.bf16.mxu1 %vm732_vm4, %v5061_v5 }
  0xa3   : > { %4096 = vmatmul.mubr.msk.bf16.gmra.mxu0 %vm732_vm4, %v5161_v45 }
  0xa4   : > { %4135 = vmatprep.mubr.msk.bf16.mxu0 %vm732_vm4, %v6314_v4  ;;  %v1876_v4 = vor.u32 %v1875_v16, %v1872_v13  ;;  %v2760_v13 = vsel %vm781_vm1, %v3754_v21, 0 }
  0xa8   : > { %4062 = vmatmul.mubr.msk.bf16.gmra.mxu1 %vm732_vm4, %v5070_v55 }
  0xa9   : > { %4101 = vmatprep.mubr.msk.bf16.mxu1 %vm732_vm4, %v4876_v57  ;;  %v3735_v57 = vld [vmem:[%s6228_s1 + $0xe] sm:$0x3] }
  0xaa   : > { %v2548_v16 = vsel %vm781_vm1, %v3735_v57, 0 }
  0xab   : > { %4136 = vmatmul.mubr.msk.bf16.vlgmr.msra.gmra.mxu0 %vm732_vm4, %v6315_v38 }
  0xac   : > { %4202 = vmatpush3.bf16.msra.mxu0 %v2320_v9  ;;  %4139 = vmatprep.mubr.msk.bf16.mxu0 %vm732_vm4, %v6316_v42  ;;  %v1877_v9 = vrot.slane %v1876_v4, 4 }
  0xad   : > { %4314 = vmatprep.subr.msk.bf16.mxu0 %vm781_vm1, %v3754_v21 }
  0xae   : > { %v1882_v44 = vsel %vm4534_vm5, %v1877_v9, %v1881_v62 }
  0xb0   : > { %4102 = vmatmul.mubr.msk.bf16.vlgmr.msra.gmra.mxu1 %vm732_vm4, %v4903_v2 }
  0xb1   : > { %4168 = vmatpush3.bf16.msra.mxu1 %v2114_v22  ;;  %4105 = vmatprep.mubr.msk.bf16.mxu1 %vm732_vm4, %v4987_v51  ;;  %v1887_v22 = vrot.slane %v1886_v52, 4 }
  0xb2   : > { %4313 = vmatprep.subr.msk.bf16.mxu1 %vm781_vm1, %v3735_v57 }
  0xb3   : > { %4140 = vmatmul.mubr.msk.bf16.gmra.mxu0 %vm732_vm4, %v6317_v19  ;;  %v1892_v30 = vsel %vm4534_vm5, %v1887_v22, %v1891_v60 }
  0xb4   : > { %4143 = vmatprep.mubr.msk.bf16.mxu0 %vm732_vm4, %v6318_v46  ;;  %v5262_v28 = vcombine.low %v1882_v44, %v1892_v30 }
  0xb6   : > { %6326 = vst [vmem:[#allocation18_spill] sm:$0xff] %v5262_v28 }
  0xb8   : > { %4106 = vmatmul.mubr.msk.bf16.gmra.mxu1 %vm732_vm4, %v4998_v63 }
  0xb9   : > { %4109 = vmatprep.mubr.msk.bf16.mxu1 %vm732_vm4, %v5002_v18 }
  0xbb   : > { %4144 = vmatmul.mubr.msk.bf16.gmra.mxu0 %vm732_vm4, %v6319_v48 }
  0xbc   : > { %4147 = vmatprep.mubr.msk.bf16.mxu0 %vm732_vm4, %v4867_v31 }
  0xc0   : > { %4110 = vmatmul.mubr.msk.bf16.gmra.mxu1 %vm732_vm4, %v5008_v10 }
  0xc1   : > { %4113 = vmatprep.mubr.msk.bf16.mxu1 %vm732_vm4, %v5102_v23 }
  0xc3   : > { %4148 = vmatmul.mubr.msk.bf16.gmra.mxu0 %vm732_vm4, %v6320_v36 }
  0xc4   : > { %4151 = vmatprep.mubr.msk.bf16.mxu0 %vm732_vm4, %v6321_v6 }
  0xc8   : > { %4114 = vmatmul.mubr.msk.bf16.gmra.mxu1 %vm732_vm4, %v5112_v17 }
  0xc9   : > { %4117 = vmatprep.mubr.msk.bf16.mxu1 %vm732_vm4, %v5130_v12 }
  0xcb   : > { %4152 = vmatmul.mubr.msk.bf16.gmra.mxu0 %vm732_vm4, %v6322_v24 }
  0xcc   : > { %4155 = vmatprep.mubr.msk.bf16.mxu0 %vm732_vm4, %v6323_v37 }
  0xd0   : > { %4118 = vmatmul.mubr.msk.bf16.gmra.mxu1 %vm732_vm4, %v5136_v15 }
  0xd1   : > { %4121 = vmatprep.mubr.msk.bf16.mxu1 %vm732_vm4, %v5012_v25 }
  0xd3   : > { %4156 = vmatmul.mubr.msk.bf16.gmra.mxu0 %vm732_vm4, %v6324_v3 }
  0xd4   : > { %4159 = vmatprep.mubr.msk.bf16.mxu0 %vm732_vm4, %v6325_v33 }
  0xd8   : > { %4122 = vmatmul.mubr.msk.bf16.gmra.mxu1 %vm732_vm4, %v5035_v26 }
  0xd9   : > { %4125 = vmatprep.mubr.msk.bf16.mxu1 %vm732_vm4, %v5046_v29 }
  0xdb   : > { %4160 = vmatmul.mubr.msk.bf16.gmra.mxu0 %vm732_vm4, %v4857_v1 }
  0xdc   : > { %4163 = vmatprep.mubr.msk.bf16.mxu0 %vm732_vm4, %v4906_v32 }
  0xe0   : > { %4126 = vmatmul.mubr.msk.bf16.gmra.mxu1 %vm732_vm4, %v5061_v5 }
  0xe1   : > { %4129 = vmatprep.mubr.msk.bf16.mxu1 %vm732_vm4, %v5070_v55 }
  0xe3   : > { %4164 = vmatmul.mubr.msk.bf16.gmra.mxu0 %vm732_vm4, %v5262_v28 }
  0xe4   : > { %4203 = vmatprep.mubr.msk.bf16.mxu0 %vm732_vm4, %v4903_v2 }
  0xe8   : > { %4130 = vmatmul.mubr.msk.bf16.gmra.mxu1 %vm732_vm4, %v3663_v20 }
  0xe9   : > { %4169 = vmatprep.mubr.msk.bf16.mxu1 %vm732_vm4, %v4899_v59 }
  0xeb   : > { %4204 = vmatmul.mubr.msk.bf16.vlgmr.msra.gmra.mxu0 %vm732_vm4, %v4987_v51 }
  0xec   : > { %4270 = vmatpush3.bf16.msra.mxu0 %v2760_v13  ;;  %4207 = vmatprep.mubr.msk.bf16.mxu0 %vm732_vm4, %v4998_v63 }
  0xef   : > { %v5291_v59 = vpop.f32.mrf.mxu0 }
  0xf0   : > { %4170 = vmatmul.mubr.msk.bf16.vlgmr.msra.gmra.mxu1 %vm732_vm4, %v4937_v40 }
  0xf1   : > { %4236 = vmatpush3.bf16.msra.mxu1 %v2548_v16  ;;  %4173 = vmatprep.mubr.msk.bf16.mxu1 %vm732_vm4, %v4957_v43  ;;  %v5297_v51 = vpop.f32.mrf.mxu0 }
  0xf3   : > { %4208 = vmatmul.mubr.msk.bf16.gmra.mxu0 %vm732_vm4, %v5002_v18  ;;  %v5307_v18 = vpop.f32.mrf.mxu0 }
  0xf4   : > { %4211 = vmatprep.mubr.msk.bf16.mxu0 %vm732_vm4, %v5008_v10 }
  0xf5   : > { %v5295_v2 = vpop.f32.mrf.mxu1  ;;  %v5313_v53 = vpop.f32.mrf.mxu0 }
  0xf7   : > { %v5305_v63 = vpop.f32.mrf.mxu1 }
  0xf8   : > { %4174 = vmatmul.mubr.msk.bf16.gmra.mxu1 %vm732_vm4, %v4967_v58 }
  0xf9   : > { %4177 = vmatprep.mubr.msk.bf16.mxu1 %vm732_vm4, %v5004_v56  ;;  %v5311_v10 = vpop.f32.mrf.mxu1 }
  0xfb   : > { %4212 = vmatmul.mubr.msk.bf16.gmra.mxu0 %vm732_vm4, %v5102_v23  ;;  %v5321_v23 = vpop.f32.mrf.mxu1 }
  0xfc   : > { %4215 = vmatprep.mubr.msk.bf16.mxu0 %vm732_vm4, %v5112_v17 }
 0x100   : > { %4178 = vmatmul.mubr.msk.bf16.gmra.mxu1 %vm732_vm4, %v5016_v11 }
 0x101   : > { %4181 = vmatprep.mubr.msk.bf16.mxu1 %vm732_vm4, %v5077_v35 }
 0x102   : > { %v5323_v17 = vpop.f32.mrf.mxu0 }
 0x103   : > { %4216 = vmatmul.mubr.msk.bf16.gmra.mxu0 %vm732_vm4, %v5130_v12 }
 0x104   : > { %4219 = vmatprep.mubr.msk.bf16.mxu0 %vm732_vm4, %v5136_v15  ;;  %v5329_v21 = vpop.f32.mrf.mxu0 }
 0x106   : > { %v5327_v39 = vpop.f32.mrf.mxu1  ;;  %v5339_v15 = vpop.f32.mrf.mxu0 }
 0x108   : > { %4182 = vmatmul.mubr.msk.bf16.gmra.mxu1 %vm732_vm4, %v5084_v50  ;;  %v5337_v12 = vpop.f32.mrf.mxu1  ;;  %v5345_v62 = vpop.f32.mrf.mxu0 }
 0x109   : > { %4185 = vmatprep.mubr.msk.bf16.mxu1 %vm732_vm4, %v5118_v49 }
 0x10a   : > { %v5343_v57 = vpop.f32.mrf.mxu1 }
 0x10b   : > { %4220 = vmatmul.mubr.msk.bf16.gmra.mxu0 %vm732_vm4, %v5012_v25 }
 0x10c   : > { %4223 = vmatprep.mubr.msk.bf16.mxu0 %vm732_vm4, %v5035_v26  ;;  %v5351_v25 = vpop.f32.mrf.mxu1 }
 0x110   : > { %4186 = vmatmul.mubr.msk.bf16.gmra.mxu1 %vm732_vm4, %v5122_v8 }
 0x111   : > { %4189 = vmatprep.mubr.msk.bf16.mxu1 %vm732_vm4, %v5050_v7 }
 0x113   : > { %4224 = vmatmul.mubr.msk.bf16.gmra.mxu0 %vm732_vm4, %v5046_v29  ;;  %v5355_v26 = vpop.f32.mrf.mxu0 }
 0x114   : > { %4227 = vmatprep.mubr.msk.bf16.mxu0 %vm732_vm4, %v5061_v5  ;;  %v5373_v5 = vld [vmem:[%s4483_s24 + $0xcc] sm:$0xf] }
 0x115   : > { %v5357_v41 = vpop.f32.mrf.mxu0  ;;  %v3718_v22 = vcombine.low %v5373_v5, %v5376_v54 }
 0x117   : > { %v5361_v4 = vpop.f32.mrf.mxu1  ;;  %v5367_v29 = vpop.f32.mrf.mxu0 }
 0x118   : > { %4190 = vmatmul.mubr.msk.bf16.gmra.mxu1 %vm732_vm4, %v5073_v61  ;;  %6327 = vst [vmem:[#allocation20_spill] sm:$0xff] %v5361_v4 }
 0x119   : > { %4193 = vmatprep.mubr.msk.bf16.mxu1 %vm732_vm4, %v5092_v0  ;;  %v5369_v52 = vpop.f32.mrf.mxu1  ;;  %v5378_v9 = vpop.f32.mrf.mxu0 }
 0x11a   : > { %6328 = vst [vmem:[#allocation23_spill] sm:$0xff] %v5369_v52 }
 0x11b   : > { %4228 = vmatmul.mubr.msk.bf16.gmra.mxu0 %vm732_vm4, %v5070_v55  ;;  %v5384_v60 = vpop.f32.mrf.mxu1 }
 0x11c   : > { %4231 = vmatprep.mubr.msk.bf16.mxu0 %vm732_vm4, %v3663_v20  ;;  %6329 = vst [vmem:[#allocation22_spill] sm:$0xff] %v5384_v60 }
 0x11d   : > { %v5391_v44 = vpop.f32.mrf.mxu1 }
 0x11e   : > { %6330 = vst [vmem:[#allocation25_spill] sm:$0xff] %v5391_v44 }
 0x120   : > { %4194 = vmatmul.mubr.msk.bf16.gmra.mxu1 %vm732_vm4, %v5096_v14 }
 0x121   : > { %4197 = vmatprep.mubr.msk.bf16.mxu1 %vm732_vm4, %v5161_v45 }
 0x123   : > { %v5388_v55 = vpop.f32.mrf.mxu0  ;;  %4232 = vmatmul.mubr.msk.bf16.gmra.mxu0 %vm732_vm4, %v3718_v22 }
 0x124   : > { %4271 = vmatprep.mubr.msk.bf16.mxu0 %vm732_vm4, %v4937_v40 }
 0x125   : > { %v5395_v30 = vpop.f32.mrf.mxu0 }
 0x127   : > { %v5397_v20 = vpop.f32.mrf.mxu0 }
 0x128   : > { %v5399_v13 = vpop.f32.mrf.mxu1  ;;  %4198 = vmatmul.mubr.msk.bf16.gmra.mxu1 %vm732_vm4, %v5184_v47 }
 0x129   : > { %6331 = vst [vmem:[#allocation27_spill] sm:$0xff] %v5399_v13  ;;  %v5403_v16 = vpop.f32.mrf.mxu0  ;;  %4237 = vmatprep.mubr.msk.bf16.mxu1 %vm732_vm4, %v6315_v38 }
 0x12a   : > { %v5407_v22 = vpop.f32.mrf.mxu1 }
 0x12b   : > { %6332 = vst [vmem:[#allocation7_spill] sm:$0xff] %v5407_v22  ;;  %v4069_v44 = vpop.f32.mrf.mxu0  ;;  %4272 = vmatmul.mubr.msk.bf16.vlgmr.msra.gmra.mxu0 %vm732_vm4, %v4957_v43 }
 0x12c   : > { %v5411_v40 = vpop.f32.mrf.mxu1  ;;  %4275 = vmatprep.mubr.msk.bf16.mxu0 %vm732_vm4, %v4967_v58 }
 0x12d   : > { %6333 = vst [vmem:[#allocation8_spill] sm:$0xff] %v5411_v40  ;;  %v1504_v13 = vpop.f32.mrf.mxu0 }
 0x12e   : > { %v5415_v60 = vpop.f32.mrf.mxu1 }
 0x12f   : > { %6334 = vst [vmem:[#allocation10_spill] sm:$0xff] %v5415_v60  ;;  %v4070_v52 = vpop.f32.mrf.mxu0 }
 0x130   : > { %v4035_v27 = vpop.f32.mrf.mxu1  ;;  %4238 = vmatmul.mubr.msk.bf16.vlgmr.msra.gmra.mxu1 %vm732_vm4, %v6316_v42 }
 0x131   : > { %v1120_v38 = vadd.f32 %v4035_v27, %v5291_v59  ;;  %v1507_v22 = vpop.f32.mrf.mxu0  ;;  %4241 = vmatprep.mubr.msk.bf16.mxu1 %vm732_vm4, %v6317_v19 }
 0x132   : > { %v1111_v43 = vpop.f32.mrf.mxu1 }
 0x133   : > { %v5422_v28 = vadd.f32 %v4069_v44, %v1120_v38  ;;  %v1112_v40 = vadd.f32 %v1111_v43, %v5297_v51  ;;  %v4073_v58 = vpop.f32.mrf.mxu0  ;;  %4276 = vmatmul.mubr.msk.bf16.gmra.mxu0 %vm732_vm4, %v5004_v56 }
 0x134   : > { %v4036_v60 = vpop.f32.mrf.mxu1  ;;  %4279 = vmatprep.mubr.msk.bf16.mxu0 %vm732_vm4, %v5016_v11 }
 0x135   : > { %v5429_v42 = vadd.f32 %v1504_v13, %v1112_v40  ;;  %v1123_v27 = vadd.f32 %v4036_v60, %v5307_v18  ;;  %v1520_v59 = vpop.f32.mrf.mxu0 }
 0x136   : > { %v1114_v4 = vpop.f32.mrf.mxu1 }
 0x137   : > { %v5432_v19 = vadd.f32 %v4070_v52, %v1123_v27  ;;  %v1115_v44 = vadd.f32 %v1114_v4, %v5313_v53  ;;  %v4074_v38 = vpop.f32.mrf.mxu0 }
 0x138   : > { %v4039_v51 = vpop.f32.mrf.mxu1  ;;  %4242 = vmatmul.mubr.msk.bf16.gmra.mxu1 %vm732_vm4, %v6318_v46 }
 0x139   : > { %v5437_v56 = vadd.f32 %v1507_v22, %v1115_v44  ;;  %v1136_v43 = vadd.f32 %v4039_v51, %v5323_v17  ;;  %v1523_v11 = vpop.f32.mrf.mxu0  ;;  %4245 = vmatprep.mubr.msk.bf16.mxu1 %vm732_vm4, %v6319_v48 }
 0x13a   : > { %v1127_v18 = vpop.f32.mrf.mxu1 }
 0x13b   : > { %v5442_v60 = vadd.f32 %v4073_v58, %v1136_v43  ;;  %v1128_v52 = vadd.f32 %v1127_v18, %v5329_v21  ;;  %v4077_v13 = vpop.f32.mrf.mxu0  ;;  %4280 = vmatmul.mubr.msk.bf16.gmra.mxu0 %vm732_vm4, %v5077_v35 }
 0x13c   : > { %v4040_v53 = vpop.f32.mrf.mxu1  ;;  %4283 = vmatprep.mubr.msk.bf16.mxu0 %vm732_vm4, %v5084_v50 }
 0x13d   : > { %v5449_v46 = vadd.f32 %v1520_v59, %v1128_v52  ;;  %v1139_v17 = vadd.f32 %v4040_v53, %v5339_v15  ;;  %v1536_v4 = vpop.f32.mrf.mxu0 }
 0x13e   : > { %v1130_v22 = vpop.f32.mrf.mxu1 }
 0x13f   : > { %v5452_v48 = vadd.f32 %v4074_v38, %v1139_v17  ;;  %v1131_v40 = vadd.f32 %v1130_v22, %v5345_v62  ;;  %v4078_v58 = vpop.f32.mrf.mxu0 }
 0x140   : > { %v4043_v21 = vpop.f32.mrf.mxu1  ;;  %4246 = vmatmul.mubr.msk.bf16.gmra.mxu1 %vm732_vm4, %v4867_v31 }
 0x141   : > { %v5457_v35 = vadd.f32 %v1523_v11, %v1131_v40  ;;  %v1152_v27 = vadd.f32 %v4043_v21, %v5355_v26  ;;  %v1539_v50 = vpop.f32.mrf.mxu0  ;;  %4249 = vmatprep.mubr.msk.bf16.mxu1 %vm732_vm4, %v6320_v36  ;;  %v2519_v21 = vshll.u32 %v5373_v5, 16 }
 0x142   : > { %v1143_v15 = vpop.f32.mrf.mxu1 }
 0x143   : > { %v5462_v59 = vadd.f32 %v4077_v13, %v1152_v27  ;;  %v1144_v44 = vadd.f32 %v1143_v15, %v5357_v41  ;;  %v4081_v38 = vpop.f32.mrf.mxu0  ;;  %4284 = vmatmul.mubr.msk.bf16.gmra.mxu0 %vm732_vm4, %v5118_v49  ;;  %v2529_v27 = vshrl.u32 %v5376_v54, 16 }
 0x144   : > { %v4044_v62 = vpop.f32.mrf.mxu1  ;;  %4287 = vmatprep.mubr.msk.bf16.mxu0 %vm732_vm4, %v5122_v8 }
 0x145   : > { %v5469_v31 = vadd.f32 %v1536_v4, %v1144_v44  ;;  %v1155_v26 = vadd.f32 %v4044_v62, %v5367_v29  ;;  %v1552_v51 = vpop.f32.mrf.mxu0 }
 0x146   : > { %v1146_v43 = vpop.f32.mrf.mxu1 }
 0x147   : > { %v5472_v36 = vadd.f32 %v4078_v58, %v1155_v26  ;;  %v1147_v11 = vadd.f32 %v1146_v43, %v5378_v9  ;;  %v4082_v18 = vpop.f32.mrf.mxu0  ;;  %v2521_v26 = vrot.slane %v2519_v21, 5 }
 0x148   : > { %v4047_v41 = vpop.f32.mrf.mxu1  ;;  %4250 = vmatmul.mubr.msk.bf16.gmra.mxu1 %vm732_vm4, %v6321_v6 }
 0x149   : > { %v5477_v49 = vadd.f32 %v1539_v50, %v1147_v11  ;;  %v1168_v52 = vadd.f32 %v4047_v41, %v5388_v55  ;;  %v1555_v8 = vpop.f32.mrf.mxu0  ;;  %4253 = vmatprep.mubr.msk.bf16.mxu1 %vm732_vm4, %v6322_v24 }
 0x14a   : > { %v1159_v29 = vpop.f32.mrf.mxu1 }
 0x14b   : > { %v5482_v13 = vadd.f32 %v4081_v38, %v1168_v52  ;;  %v1160_v53 = vadd.f32 %v1159_v29, %v5395_v30  ;;  %v4085_v17 = vpop.f32.mrf.mxu0  ;;  %4288 = vmatmul.mubr.msk.bf16.gmra.mxu0 %vm732_vm4, %v5050_v7  ;;  %v2516_v30 = vshrl.u32 %v5373_v5, 16  ;;  %v293_v52 = vld [vmem:[%s4483_s24 + $0xd4] sm:$0x1] }
 0x14c   : > { %v4048_v9 = vpop.f32.mrf.mxu1  ;;  %4291 = vmatprep.mubr.msk.bf16.mxu0 %vm732_vm4, %v5073_v61  ;;  %v2525_v61 = vshll.u32 %v5376_v54, 16 }
 0x14d   : > { %v5489_v6 = vadd.f32 %v1552_v51, %v1160_v53  ;;  %v1171_v55 = vadd.f32 %v4048_v9, %v5397_v20  ;;  %v1568_v4 = vpop.f32.mrf.mxu0  ;;  %v2746_v51 = vrot.slane %v5376_v54, 5  ;;  %v3753_v54 = vrot.slane %v5373_v5, 9 }
 0x14e   : > { %v1162_v22 = vpop.f32.mrf.mxu1  ;;  %v2749_v9 = vrot.slane %v293_v52, 5 }
 0x14f   : > { %v5492_v24 = vadd.f32 %v4082_v18, %v1171_v55  ;;  %v1163_v40 = vadd.f32 %v1162_v22, %v5403_v16  ;;  %v4086_v58 = vpop.f32.mrf.mxu0  ;;  %v2747_v21 = vsel %vm4869_vm8, %v3753_v54, %v2746_v51 }
 0x150   : > { %v4051_v7 = vpop.f32.mrf.mxu1  ;;  %4254 = vmatmul.mubr.msk.bf16.gmra.mxu1 %vm732_vm4, %v6323_v37  ;;  %v2518_v37 = vrot.slane %v2516_v30, 4 }
 0x151   : > { %v5501_v20 = vadd.f32 %v1555_v8, %v1163_v40  ;;  %v1184_v50 = vadd.f32 %v4051_v7, %v5295_v2  ;;  %v1571_v15 = vpop.f32.mrf.mxu0  ;;  %4257 = vmatprep.mubr.msk.bf16.mxu1 %vm732_vm4, %v6324_v3  ;;  %v2527_v2 = vrot.slane %v2525_v61, 5  ;;  %v2531_v3 = vrot.slane %v2529_v27, 4 }
 0x152   : > { %v1175_v16 = vpop.f32.mrf.mxu1 }
 0x153   : > { %v5506_v44 = vadd.f32 %v4085_v17, %v1184_v50  ;;  %v1176_v38 = vadd.f32 %v1175_v16, %v5305_v63  ;;  %v4089_v62 = vpop.f32.mrf.mxu0  ;;  %4292 = vmatmul.mubr.msk.bf16.gmra.mxu0 %vm732_vm4, %v5092_v0  ;;  %v2748_v17 = vrot.slane %v2746_v51, 4  ;;  %v2532_v22 = vor.u32 %v2531_v3, %v2527_v2 }
 0x154   : > { %v4052_v43 = vpop.f32.mrf.mxu1  ;;  %4295 = vmatprep.mubr.msk.bf16.mxu0 %vm732_vm4, %v5096_v14  ;;  %v2522_v14 = vor.u32 %v2521_v26, %v2518_v37  ;;  %v6335_v37 = vld [vmem:[#allocation20_spill] sm:$0xff] }
 0x155   : > { %v5514_v11 = vadd.f32 %v1568_v4, %v1176_v38  ;;  %v1187_v18 = vadd.f32 %v4052_v43, %v5311_v10  ;;  %v1584_v41 = vpop.f32.mrf.mxu0  ;;  %v2533_v27 = vrot.slane %v2532_v22, 4 }
 0x156   : > { %v1178_v63 = vpop.f32.mrf.mxu1 }
 0x157   : > { %v5518_v8 = vadd.f32 %v4086_v58, %v1187_v18  ;;  %v1179_v0 = vadd.f32 %v1178_v63, %v5321_v23  ;;  %v4090_v29 = vpop.f32.mrf.mxu0  ;;  %v2535_v23 = vshll.u32 %v293_v52, 16  ;;  %v6338_v63 = vld [vmem:[#allocation23_spill] sm:$0xff] }
 0x158   : > { %v4055_v53 = vpop.f32.mrf.mxu1  ;;  %4258 = vmatmul.mubr.msk.bf16.gmra.mxu1 %vm732_vm4, %v6325_v33 }
 0x159   : > { %v5524_v55 = vadd.f32 %v1571_v15, %v1179_v0  ;;  %v1200_v10 = vadd.f32 %v4055_v53, %v5327_v39  ;;  %v1587_v4 = vpop.f32.mrf.mxu0  ;;  %4261 = vmatprep.mubr.msk.bf16.mxu1 %vm732_vm4, %v4857_v1  ;;  %v2523_v39 = vrot.slane %v2522_v14, 4  ;;  %v2750_v1 = vsel %vm4869_vm8, %v2748_v17, %v2749_v9  ;;  %v6339_v53 = vld [vmem:[#allocation22_spill] sm:$0xff] }
 0x15a   : > { %v1191_v40 = vpop.f32.mrf.mxu1  ;;  %v2537_v50 = vrot.slane %v2535_v23, 5  ;;  %v3755_v38 = vcombine.low %v2747_v21, %v2750_v1  ;;  %v6342_v1 = vld [vmem:[#allocation7_spill] sm:$0xff] }
 0x15b   : > { %v5529_v58 = vadd.f32 %v4089_v62, %v1200_v10  ;;  %v1192_v5 = vadd.f32 %v1191_v40, %v5337_v12  ;;  %v4093_v30 = vpop.f32.mrf.mxu0  ;;  %4296 = vmatmul.mubr.msk.bf16.gmra.mxu0 %vm732_vm4, %v5161_v45  ;;  %v2528_v3 = vsel %vm4534_vm5, %v2523_v39, %v2527_v2  ;;  %v6340_v10 = vld [vmem:[#allocation25_spill] sm:$0xff] }
 0x15c   : > { %v4056_v33 = vpop.f32.mrf.mxu1  ;;  %4299 = vmatprep.mubr.msk.bf16.mxu0 %vm732_vm4, %v5184_v47 }
 0x15d   : > { %v5540_v7 = vadd.f32 %v1584_v41, %v1192_v5  ;;  %v1203_v61 = vadd.f32 %v4056_v33, %v5343_v57  ;;  %v1600_v12 = vpop.f32.mrf.mxu0  ;;  %v6336_v57 = vld [vmem:[#allocation18_spill] sm:$0xff]  ;;  %v6341_v5 = vld [vmem:[#allocation27_spill] sm:$0xff] }
 0x15e   : > { %v1194_v15 = vpop.f32.mrf.mxu1 }
 0x15f   : > { %v5543_v45 = vadd.f32 %v4090_v29, %v1203_v61  ;;  %v1195_v16 = vadd.f32 %v1194_v15, %v5351_v25  ;;  %v4094_v47 = vpop.f32.mrf.mxu0  ;;  %v2538_v25 = vsel %vm4534_vm5, %v2533_v27, %v2537_v50  ;;  %v6343_v15 = vld [vmem:[#allocation8_spill] sm:$0xff] }
 0x160   : > { %v4059_v62 = vpop.f32.mrf.mxu1  ;;  %4262 = vmatmul.mubr.msk.bf16.gmra.mxu1 %vm732_vm4, %v4906_v32  ;;  %v3736_v29 = vcombine.low %v2528_v3, %v2538_v25 }
 0x161   : > { %v5548_v34 = vadd.f32 %v1587_v4, %v1195_v16  ;;  %v1216_v26 = vadd.f32 %v4059_v62, %v6335_v37  ;;  %v1603_v51 = vpop.f32.mrf.mxu0  ;;  %4265 = vmatprep.mubr.msk.bf16.mxu1 %vm732_vm4, %v6336_v57  ;;  %v6344_v37 = vld [vmem:[#allocation10_spill] sm:$0xff] }
 0x162   : > { %v1207_v18 = vpop.f32.mrf.mxu1 }
 0x163   : > { %v5557_v41 = vadd.f32 %v4093_v30, %v1216_v26  ;;  %v1208_v52 = vadd.f32 %v1207_v18, %v6338_v63  ;;  %v4097_v32 = vpop.f32.mrf.mxu0  ;;  %4300 = vmatmul.mubr.msk.bf16.gmra.mxu0 %vm732_vm4, %v3755_v38 }
 0x164   : > { %v4060_v0 = vpop.f32.mrf.mxu1 }
 0x165   : > { %v5561_v54 = vadd.f32 %v1600_v12, %v1208_v52  ;;  %v1219_v14 = vadd.f32 %v4060_v0, %v6339_v53  ;;  %v1616_v17 = vpop.f32.mrf.mxu0 }
 0x166   : > { %v1210_v9 = vpop.f32.mrf.mxu1 }
 0x167   : > { %v5564_v2 = vadd.f32 %v4094_v47, %v1219_v14  ;;  %v1211_v4 = vadd.f32 %v1210_v9, %v6340_v10  ;;  %v4098_v22 = vpop.f32.mrf.mxu0 }
 0x168   : > { %v4063_v23 = vpop.f32.mrf.mxu1  ;;  %4266 = vmatmul.mubr.msk.bf16.gmra.mxu1 %vm732_vm4, %v3736_v29 }
 0x169   : > { %v5568_v40 = vadd.f32 %v1603_v51, %v1211_v4  ;;  %v1232_v30 = vadd.f32 %v4063_v23, %v6341_v5  ;;  %v1619_v33 = vpop.f32.mrf.mxu0 }
 0x16a   : > { %v1223_v39 = vpop.f32.mrf.mxu1 }
 0x16b   : > { %v5571_v21 = vadd.f32 %v4097_v32, %v1232_v30  ;;  %v1224_v61 = vadd.f32 %v1223_v39, %v6342_v1  ;;  %v4137_v12 = vpop.f32.mrf.mxu0 }
 0x16c   : > { %v4064_v27 = vpop.f32.mrf.mxu1 }
 0x16d   : > { %v5574_v50 = vadd.f32 %v1616_v17, %v1224_v61  ;;  %v1235_v16 = vadd.f32 %v4064_v27, %v6343_v15  ;;  %v1938_v47 = vpop.f32.mrf.mxu0 }
 0x16e   : > { %v1226_v38 = vpop.f32.mrf.mxu1 }
 0x16f   : > { %v5577_v62 = vadd.f32 %v4098_v22, %v1235_v16  ;;  %v1227_v26 = vadd.f32 %v1226_v38, %v6344_v37  ;;  %v4138_v51 = vpop.f32.mrf.mxu0 }
 0x170   : > { %v4103_v57 = vpop.f32.mrf.mxu1 }
 0x171   : > { %v5580_v43 = vadd.f32 %v1619_v33, %v1227_v26  ;;  %v1839_v3 = vadd.f32 %v4103_v57, %v5422_v28  ;;  %v1941_v25 = vpop.f32.mrf.mxu0 }
 0x172   : > { %v1710_v18 = vpop.f32.mrf.mxu1 }
 0x173   : > { %v5583_v63 = vadd.f32 %v4137_v12, %v1839_v3  ;;  %v1837_v52 = vadd.f32 %v1710_v18, %v5429_v42  ;;  %v4141_v32 = vpop.f32.mrf.mxu0 }
 0x174   : > { %v4104_v0 = vpop.f32.mrf.mxu1 }
 0x175   : > { %v5586_v29 = vadd.f32 %v1938_v47, %v1837_v52  ;;  %v1840_v53 = vadd.f32 %v4104_v0, %v5432_v19  ;;  %v1954_v14 = vpop.f32.mrf.mxu0 }
 0x176   : > { %v1713_v17 = vpop.f32.mrf.mxu1 }
 0x177   : > { %v5589_v9 = vadd.f32 %v4138_v51, %v1840_v53  ;;  %v1838_v10 = vadd.f32 %v1713_v17, %v5437_v56  ;;  %v4142_v4 = vpop.f32.mrf.mxu0 }
 0x178   : > { %v4107_v28 = vpop.f32.mrf.mxu1 }
 0x179   : > { %v5592_v22 = vadd.f32 %v1941_v25, %v1838_v10  ;;  %v1843_v23 = vadd.f32 %v4107_v28, %v5442_v60  ;;  %v1957_v5 = vpop.f32.mrf.mxu0 }
 0x17a   : > { %v1726_v42 = vpop.f32.mrf.mxu1 }
 0x17b   : > { %v5595_v30 = vadd.f32 %v4141_v32, %v1843_v23  ;;  %v1841_v33 = vadd.f32 %v1726_v42, %v5449_v46  ;;  %v4145_v39 = vpop.f32.mrf.mxu0 }
 0x17c   : > { %v4108_v19 = vpop.f32.mrf.mxu1 }
 0x17d   : > { %v5598_v1 = vadd.f32 %v1954_v14, %v1841_v33  ;;  %v1844_v61 = vadd.f32 %v4108_v19, %v5452_v48  ;;  %v1970_v12 = vpop.f32.mrf.mxu0 }
 0x17e   : > { %v1729_v56 = vpop.f32.mrf.mxu1 }
 0x17f   : > { %v5601_v27 = vadd.f32 %v4142_v4, %v1844_v61  ;;  %v1842_v15 = vadd.f32 %v1729_v56, %v5457_v35  ;;  %v4146_v16 = vpop.f32.mrf.mxu0 }
 0x180   : > { %v4111_v60 = vpop.f32.mrf.mxu1 }
 0x181   : > { %v5604_v47 = vadd.f32 %v1957_v5, %v1842_v15  ;;  %v1847_v38 = vadd.f32 %v4111_v60, %v5462_v59  ;;  %v1973_v37 = vpop.f32.mrf.mxu0 }
 0x182   : > { %v1742_v46 = vpop.f32.mrf.mxu1 }
 0x183   : > { %v5607_v26 = vadd.f32 %v4145_v39, %v1847_v38  ;;  %v1845_v51 = vadd.f32 %v1742_v46, %v5469_v31  ;;  %v4149_v57 = vpop.f32.mrf.mxu0 }
 0x184   : > { %v4112_v48 = vpop.f32.mrf.mxu1 }
 0x185   : > { %v5610_v3 = vadd.f32 %v1970_v12, %v1845_v51  ;;  %v1848_v25 = vadd.f32 %v4112_v48, %v5472_v36  ;;  %v1986_v18 = vpop.f32.mrf.mxu0 }
 0x186   : > { %v1745_v35 = vpop.f32.mrf.mxu1 }
 0x187   : > { %v5613_v52 = vadd.f32 %v4146_v16, %v1848_v25  ;;  %v1846_v32 = vadd.f32 %v1745_v35, %v5477_v49  ;;  %v4150_v0 = vpop.f32.mrf.mxu0 }
 0x188   : > { %v4115_v59 = vpop.f32.mrf.mxu1 }
 0x189   : > { %v5616_v53 = vadd.f32 %v1973_v37, %v1846_v32  ;;  %v1851_v14 = vadd.f32 %v4115_v59, %v5482_v13  ;;  %v1989_v17 = vpop.f32.mrf.mxu0 }
 0x18a   : > { %v1758_v31 = vpop.f32.mrf.mxu1 }
 0x18b   : > { %v5619_v10 = vadd.f32 %v4149_v57, %v1851_v14  ;;  %v1849_v4 = vadd.f32 %v1758_v31, %v5489_v6  ;;  %v4153_v28 = vpop.f32.mrf.mxu0 }
 0x18c   : > { %v4116_v36 = vpop.f32.mrf.mxu1 }
 0x18d   : > { %v5622_v23 = vadd.f32 %v1986_v18, %v1849_v4  ;;  %v1852_v5 = vadd.f32 %v4116_v36, %v5492_v24  ;;  %v2002_v42 = vpop.f32.mrf.mxu0 }
 0x18e   : > { %v1761_v49 = vpop.f32.mrf.mxu1 }
 0x18f   : > { %v5625_v33 = vadd.f32 %v4150_v0, %v1852_v5  ;;  %v1850_v39 = vadd.f32 %v1761_v49, %v5501_v20  ;;  %v4154_v19 = vpop.f32.mrf.mxu0 }
 0x190   : > { %v4119_v13 = vpop.f32.mrf.mxu1 }
 0x191   : > { %v5628_v61 = vadd.f32 %v1989_v17, %v1850_v39  ;;  %v1855_v12 = vadd.f32 %v4119_v13, %v5506_v44  ;;  %v2005_v56 = vpop.f32.mrf.mxu0 }
 0x192   : > { %v1774_v6 = vpop.f32.mrf.mxu1 }
 0x193   : > { %v5631_v15 = vadd.f32 %v4153_v28, %v1855_v12  ;;  %v1853_v16 = vadd.f32 %v1774_v6, %v5514_v11  ;;  %v4157_v60 = vpop.f32.mrf.mxu0 }
 0x194   : > { %v4120_v24 = vpop.f32.mrf.mxu1 }
 0x195   : > { %v5634_v38 = vadd.f32 %v2002_v42, %v1853_v16  ;;  %v1856_v37 = vadd.f32 %v4120_v24, %v5518_v8  ;;  %v2018_v46 = vpop.f32.mrf.mxu0 }
 0x196   : > { %v1777_v20 = vpop.f32.mrf.mxu1 }
 0x197   : > { %v5637_v51 = vadd.f32 %v4154_v19, %v1856_v37  ;;  %v1854_v57 = vadd.f32 %v1777_v20, %v5524_v55  ;;  %v4158_v48 = vpop.f32.mrf.mxu0 }
 0x198   : > { %v4123_v44 = vpop.f32.mrf.mxu1 }
 0x199   : > { %v5640_v25 = vadd.f32 %v2005_v56, %v1854_v57  ;;  %v1859_v18 = vadd.f32 %v4123_v44, %v5529_v58  ;;  %v2021_v35 = vpop.f32.mrf.mxu0 }
 0x19a   : > { %v1790_v11 = vpop.f32.mrf.mxu1 }
 0x19b   : > { %v5643_v32 = vadd.f32 %v4157_v60, %v1859_v18  ;;  %v1857_v0 = vadd.f32 %v1790_v11, %v5540_v7  ;;  %v4161_v59 = vpop.f32.mrf.mxu0 }
 0x19c   : > { %v4124_v8 = vpop.f32.mrf.mxu1 }
 0x19d   : > { %v5646_v14 = vadd.f32 %v2018_v46, %v1857_v0  ;;  %v1860_v17 = vadd.f32 %v4124_v8, %v5543_v45  ;;  %v2034_v31 = vpop.f32.mrf.mxu0 }
 0x19e   : > { %v1793_v55 = vpop.f32.mrf.mxu1 }
 0x19f   : > { %v5649_v4 = vadd.f32 %v4158_v48, %v1860_v17  ;;  %v1858_v28 = vadd.f32 %v1793_v55, %v5548_v34  ;;  %v4162_v36 = vpop.f32.mrf.mxu0 }
 0x1a0   : > { %v4127_v58 = vpop.f32.mrf.mxu1 }
 0x1a1   : > { %v5652_v5 = vadd.f32 %v2021_v35, %v1858_v28  ;;  %v1863_v42 = vadd.f32 %v4127_v58, %v5557_v41  ;;  %v2037_v49 = vpop.f32.mrf.mxu0 }
 0x1a2   : > { %v1806_v7 = vpop.f32.mrf.mxu1 }
 0x1a3   : > { %v5655_v39 = vadd.f32 %v4161_v59, %v1863_v42  ;;  %v1861_v19 = vadd.f32 %v1806_v7, %v5561_v54  ;;  %v4165_v13 = vpop.f32.mrf.mxu0 }
 0x1a4   : > { %v4128_v45 = vpop.f32.mrf.mxu1 }
 0x1a5   : > { %v5658_v12 = vadd.f32 %v2034_v31, %v1861_v19  ;;  %v1864_v56 = vadd.f32 %v4128_v45, %v5564_v2  ;;  %v2050_v6 = vpop.f32.mrf.mxu0 }
 0x1a6   : > { %v1809_v34 = vpop.f32.mrf.mxu1 }
 0x1a7   : > { %v5661_v16 = vadd.f32 %v4162_v36, %v1864_v56  ;;  %v1862_v60 = vadd.f32 %v1809_v34, %v5568_v40  ;;  %v4166_v24 = vpop.f32.mrf.mxu0 }
 0x1a8   : > { %v4131_v41 = vpop.f32.mrf.mxu1 }
 0x1a9   : > { %v5664_v37 = vadd.f32 %v2037_v49, %v1862_v60  ;;  %v1867_v46 = vadd.f32 %v4131_v41, %v5571_v21  ;;  %v2053_v20 = vpop.f32.mrf.mxu0 }
 0x1aa   : > { %v1822_v54 = vpop.f32.mrf.mxu1 }
 0x1ab   : > { %v5667_v57 = vadd.f32 %v4165_v13, %v1867_v46  ;;  %v1865_v48 = vadd.f32 %v1822_v54, %v5574_v50  ;;  %v4205_v44 = vpop.f32.mrf.mxu0 }
 0x1ac   : > { %v4132_v2 = vpop.f32.mrf.mxu1 }
 0x1ad   : > { %v5670_v18 = vadd.f32 %v2050_v6, %v1865_v48  ;;  %v1868_v35 = vadd.f32 %v4132_v2, %v5577_v62  ;;  %v2356_v11 = vpop.f32.mrf.mxu0 }
 0x1ae   : > { %v1825_v40 = vpop.f32.mrf.mxu1 }
 0x1af   : > { %v5673_v0 = vadd.f32 %v4166_v24, %v1868_v35  ;;  %v1866_v59 = vadd.f32 %v1825_v40, %v5580_v43  ;;  %v4206_v8 = vpop.f32.mrf.mxu0 }
 0x1b0   : > { %v4171_v21 = vpop.f32.mrf.mxu1 }
 0x1b1   : > { %v5676_v17 = vadd.f32 %v2053_v20, %v1866_v59  ;;  %v2279_v31 = vadd.f32 %v4171_v21, %v5583_v63  ;;  %v2359_v55 = vpop.f32.mrf.mxu0 }
 0x1b2   : > { %v2150_v50 = vpop.f32.mrf.mxu1 }
 0x1b3   : > { %v5679_v28 = vadd.f32 %v4205_v44, %v2279_v31  ;;  %v2277_v36 = vadd.f32 %v2150_v50, %v5586_v29  ;;  %v4209_v58 = vpop.f32.mrf.mxu0 }
 0x1b4   : > { %v4172_v62 = vpop.f32.mrf.mxu1 }
 0x1b5   : > { %v5682_v42 = vadd.f32 %v2356_v11, %v2277_v36  ;;  %v2280_v49 = vadd.f32 %v4172_v62, %v5589_v9  ;;  %v2372_v7 = vpop.f32.mrf.mxu0 }
 0x1b6   : > { %v2153_v43 = vpop.f32.mrf.mxu1 }
 0x1b7   : > { %v5685_v19 = vadd.f32 %v4206_v8, %v2280_v49  ;;  %v2278_v13 = vadd.f32 %v2153_v43, %v5592_v22  ;;  %v4210_v45 = vpop.f32.mrf.mxu0 }
 0x1b8   : > { %v4175_v63 = vpop.f32.mrf.mxu1 }
 0x1b9   : > { %v5688_v56 = vadd.f32 %v2359_v55, %v2278_v13  ;;  %v2283_v6 = vadd.f32 %v4175_v63, %v5595_v30  ;;  %v2375_v34 = vpop.f32.mrf.mxu0 }
 0x1ba   : > { %v2166_v29 = vpop.f32.mrf.mxu1 }
 0x1bb   : > { %v5691_v60 = vadd.f32 %v4209_v58, %v2283_v6  ;;  %v2281_v24 = vadd.f32 %v2166_v29, %v5598_v1  ;;  %v4213_v41 = vpop.f32.mrf.mxu0 }
 0x1bc   : > { %v4176_v9 = vpop.f32.mrf.mxu1 }
 0x1bd   : > { %v5694_v46 = vadd.f32 %v2372_v7, %v2281_v24  ;;  %v2284_v20 = vadd.f32 %v4176_v9, %v5601_v27  ;;  %v2388_v54 = vpop.f32.mrf.mxu0 }
 0x1be   : > { %v2169_v22 = vpop.f32.mrf.mxu1 }
 0x1bf   : > { %v5697_v48 = vadd.f32 %v4210_v45, %v2284_v20  ;;  %v2282_v44 = vadd.f32 %v2169_v22, %v5604_v47  ;;  %v4214_v2 = vpop.f32.mrf.mxu0 }
 0x1c0   : > { %v4179_v30 = vpop.f32.mrf.mxu1 }
 0x1c1   : > { %v5700_v35 = vadd.f32 %v2375_v34, %v2282_v44  ;;  %v2287_v11 = vadd.f32 %v4179_v30, %v5607_v26  ;;  %v2391_v40 = vpop.f32.mrf.mxu0 }
 0x1c2   : > { %v2182_v1 = vpop.f32.mrf.mxu1 }
 0x1c3   : > { %v5703_v59 = vadd.f32 %v4213_v41, %v2287_v11  ;;  %v2285_v8 = vadd.f32 %v2182_v1, %v5610_v3  ;;  %v4217_v21 = vpop.f32.mrf.mxu0 }
 0x1c4   : > { %v4180_v27 = vpop.f32.mrf.mxu1 }
 0x1c5   : > { %v5706_v31 = vadd.f32 %v2388_v54, %v2285_v8  ;;  %v2288_v55 = vadd.f32 %v4180_v27, %v5613_v52  ;;  %v2404_v50 = vpop.f32.mrf.mxu0 }
 0x1c6   : > { %v2185_v47 = vpop.f32.mrf.mxu1 }
 0x1c7   : > { %v5709_v36 = vadd.f32 %v4214_v2, %v2288_v55  ;;  %v2286_v58 = vadd.f32 %v2185_v47, %v5616_v53  ;;  %v4218_v62 = vpop.f32.mrf.mxu0 }
 0x1c8   : > { %v4183_v26 = vpop.f32.mrf.mxu1 }
 0x1c9   : > { %v5712_v49 = vadd.f32 %v2391_v40, %v2286_v58  ;;  %v2291_v7 = vadd.f32 %v4183_v26, %v5619_v10  ;;  %v2407_v43 = vpop.f32.mrf.mxu0 }
 0x1ca   : > { %v2198_v3 = vpop.f32.mrf.mxu1 }
 0x1cb   : > { %v5715_v13 = vadd.f32 %v4217_v21, %v2291_v7  ;;  %v2289_v45 = vadd.f32 %v2198_v3, %v5622_v23  ;;  %v4221_v63 = vpop.f32.mrf.mxu0 }
 0x1cc   : > { %v4184_v52 = vpop.f32.mrf.mxu1 }
 0x1cd   : > { %v5718_v6 = vadd.f32 %v2404_v50, %v2289_v45  ;;  %v2292_v34 = vadd.f32 %v4184_v52, %v5625_v33  ;;  %v2420_v29 = vpop.f32.mrf.mxu0 }
 0x1ce   : > { %v2201_v53 = vpop.f32.mrf.mxu1 }
 0x1cf   : > { %v5721_v24 = vadd.f32 %v4218_v62, %v2292_v34  ;;  %v2290_v41 = vadd.f32 %v2201_v53, %v5628_v61  ;;  %v4222_v9 = vpop.f32.mrf.mxu0 }
 0x1d0   : > { %v4187_v10 = vpop.f32.mrf.mxu1 }
 0x1d1   : > { %v5724_v20 = vadd.f32 %v2407_v43, %v2290_v41  ;;  %v2295_v54 = vadd.f32 %v4187_v10, %v5631_v15  ;;  %v2423_v22 = vpop.f32.mrf.mxu0 }
 0x1d2   : > { %v2214_v23 = vpop.f32.mrf.mxu1 }
 0x1d3   : > { %v5727_v44 = vadd.f32 %v4221_v63, %v2295_v54  ;;  %v2293_v2 = vadd.f32 %v2214_v23, %v5634_v38  ;;  %v4225_v30 = vpop.f32.mrf.mxu0 }
 0x1d4   : > { %v4188_v33 = vpop.f32.mrf.mxu1 }
 0x1d5   : > { %v5730_v11 = vadd.f32 %v2420_v29, %v2293_v2  ;;  %v2296_v40 = vadd.f32 %v4188_v33, %v5637_v51  ;;  %v2436_v1 = vpop.f32.mrf.mxu0 }
 0x1d6   : > { %v2217_v61 = vpop.f32.mrf.mxu1 }
 0x1d7   : > { %v5733_v8 = vadd.f32 %v4222_v9, %v2296_v40  ;;  %v2294_v21 = vadd.f32 %v2217_v61, %v5640_v25  ;;  %v4226_v27 = vpop.f32.mrf.mxu0 }
 0x1d8   : > { %v4191_v15 = vpop.f32.mrf.mxu1 }
 0x1d9   : > { %v5736_v55 = vadd.f32 %v2423_v22, %v2294_v21  ;;  %v2299_v50 = vadd.f32 %v4191_v15, %v5643_v32  ;;  %v2439_v47 = vpop.f32.mrf.mxu0 }
 0x1da   : > { %v2230_v38 = vpop.f32.mrf.mxu1 }
 0x1db   : > { %v5739_v58 = vadd.f32 %v4225_v30, %v2299_v50  ;;  %v2297_v62 = vadd.f32 %v2230_v38, %v5646_v14  ;;  %v4229_v26 = vpop.f32.mrf.mxu0 }
 0x1dc   : > { %v4192_v51 = vpop.f32.mrf.mxu1 }
 0x1dd   : > { %v5742_v7 = vadd.f32 %v2436_v1, %v2297_v62  ;;  %v2300_v43 = vadd.f32 %v4192_v51, %v5649_v4  ;;  %v2452_v3 = vpop.f32.mrf.mxu0 }
 0x1de   : > { %v2233_v25 = vpop.f32.mrf.mxu1 }
 0x1df   : > { %v5745_v45 = vadd.f32 %v4226_v27, %v2300_v43  ;;  %v2298_v63 = vadd.f32 %v2233_v25, %v5652_v5  ;;  %v4230_v52 = vpop.f32.mrf.mxu0 }
 0x1e0   : > { %v4195_v32 = vpop.f32.mrf.mxu1 }
 0x1e1   : > { %v5748_v34 = vadd.f32 %v2439_v47, %v2298_v63  ;;  %v2303_v29 = vadd.f32 %v4195_v32, %v5655_v39  ;;  %v2455_v53 = vpop.f32.mrf.mxu0 }
 0x1e2   : > { %v2246_v14 = vpop.f32.mrf.mxu1 }
 0x1e3   : > { %v5751_v41 = vadd.f32 %v4229_v26, %v2303_v29  ;;  %v2301_v9 = vadd.f32 %v2246_v14, %v5658_v12  ;;  %v4233_v10 = vpop.f32.mrf.mxu0 }
 0x1e4   : > { %v4196_v4 = vpop.f32.mrf.mxu1 }
 0x1e5   : > { %v5754_v54 = vadd.f32 %v2452_v3, %v2301_v9  ;;  %v2304_v22 = vadd.f32 %v4196_v4, %v5661_v16  ;;  %v2468_v23 = vpop.f32.mrf.mxu0 }
 0x1e6   : > { %v2249_v5 = vpop.f32.mrf.mxu1 }
 0x1e7   : > { %v5757_v2 = vadd.f32 %v4230_v52, %v2304_v22  ;;  %v2302_v30 = vadd.f32 %v2249_v5, %v5664_v37  ;;  %v5760_v33 = vpop.f32.mrf.mxu0 }
 0x1e8   : > { %v4199_v39 = vpop.f32.mrf.mxu1 }
 0x1e9   : > { %v5762_v40 = vadd.f32 %v2455_v53, %v2302_v30  ;;  %v2307_v1 = vadd.f32 %v4199_v39, %v5667_v57  ;;  %v5765_v12 = vpop.f32.mrf.mxu0 }
 0x1ea   : > { %v2262_v61 = vpop.f32.mrf.mxu1 }
 0x1eb   : > { %v5767_v21 = vadd.f32 %v4233_v10, %v2307_v1  ;;  %v2305_v16 = vadd.f32 %v2262_v61, %v5670_v18  ;;  %v4273_v27 = vpop.f32.mrf.mxu0 }
 0x1ec   : > { %v5770_v15 = vpop.f32.mrf.mxu1 }
 0x1ed   : > { %v5772_v50 = vadd.f32 %v2468_v23, %v2305_v16  ;;  %v2796_v37 = vpop.f32.mrf.mxu0 }
 0x1ee   : > { %v5774_v47 = vpop.f32.mrf.mxu1 }
 0x1ef   : > { %v4274_v38 = vpop.f32.mrf.mxu0 }
 0x1f0   : > { %v4239_v62 = vpop.f32.mrf.mxu1 }
 0x1f1   : > { %v2713_v26 = vadd.f32 %v4239_v62, %v5679_v28  ;;  %v2799_v57 = vpop.f32.mrf.mxu0 }
 0x1f2   : > { %v2584_v51 = vpop.f32.mrf.mxu1 }
 0x1f3   : > { %v5777_v43 = vadd.f32 %v4273_v27, %v2713_v26  ;;  %v2711_v3 = vadd.f32 %v2584_v51, %v5682_v42  ;;  %v4277_v25 = vpop.f32.mrf.mxu0 }
 0x1f4   : > { %v4240_v18 = vpop.f32.mrf.mxu1 }
 0x1f5   : > { %v5780_v63 = vadd.f32 %v2796_v37, %v2711_v3  ;;  %v2714_v52 = vadd.f32 %v4240_v18, %v5685_v19  ;;  %v2812_v32 = vpop.f32.mrf.mxu0 }
 0x1f6   : > { %v2587_v29 = vpop.f32.mrf.mxu1 }
 0x1f7   : > { %v5783_v53 = vadd.f32 %v4274_v38, %v2714_v52  ;;  %v2712_v14 = vadd.f32 %v2587_v29, %v5688_v56  ;;  %v4278_v9 = vpop.f32.mrf.mxu0 }
 0x1f8   : > { %v4243_v28 = vpop.f32.mrf.mxu1 }
 0x1f9   : > { %v5786_v10 = vadd.f32 %v2799_v57, %v2712_v14  ;;  %v2717_v4 = vadd.f32 %v4243_v28, %v5691_v60  ;;  %v2815_v22 = vpop.f32.mrf.mxu0 }
 0x1fa   : > { %v2600_v42 = vpop.f32.mrf.mxu1 }
 0x1fb   : > { %v5789_v23 = vadd.f32 %v4277_v25, %v2717_v4  ;;  %v2715_v5 = vadd.f32 %v2600_v42, %v5694_v46  ;;  %v4281_v30 = vpop.f32.mrf.mxu0 }
 0x1fc   : > { %v4244_v19 = vpop.f32.mrf.mxu1 }
 0x1fd   : > { %v5792_v39 = vadd.f32 %v2812_v32, %v2715_v5  ;;  %v2718_v1 = vadd.f32 %v4244_v19, %v5697_v48  ;;  %v2828_v61 = vpop.f32.mrf.mxu0 }
 0x1fe   : > { %v2603_v56 = vpop.f32.mrf.mxu1 }
 0x1ff   : > { %v5795_v16 = vadd.f32 %v4278_v9, %v2718_v1  ;;  %v2716_v27 = vadd.f32 %v2603_v56, %v5700_v35  ;;  %v4282_v37 = vpop.f32.mrf.mxu0 }
 0x200   : > { %v4247_v60 = vpop.f32.mrf.mxu1 }
 0x201   : > { %v5798_v38 = vadd.f32 %v2815_v22, %v2716_v27  ;;  %v2721_v62 = vadd.f32 %v4247_v60, %v5703_v59  ;;  %v2831_v26 = vpop.f32.mrf.mxu0 }
 0x202   : > { %v2616_v46 = vpop.f32.mrf.mxu1 }
 0x203   : > { %v5801_v57 = vadd.f32 %v4281_v30, %v2721_v62  ;;  %v2719_v51 = vadd.f32 %v2616_v46, %v5706_v31  ;;  %v4285_v3 = vpop.f32.mrf.mxu0 }
 0x204   : > { %v4248_v48 = vpop.f32.mrf.mxu1 }
 0x205   : > { %v5804_v25 = vadd.f32 %v2828_v61, %v2719_v51  ;;  %v2722_v18 = vadd.f32 %v4248_v48, %v5709_v36  ;;  %v2844_v52 = vpop.f32.mrf.mxu0 }
 0x206   : > { %v2619_v35 = vpop.f32.mrf.mxu1 }
 0x207   : > { %v5807_v32 = vadd.f32 %v4282_v37, %v2722_v18  ;;  %v2720_v29 = vadd.f32 %v2619_v35, %v5712_v49  ;;  %v4286_v14 = vpop.f32.mrf.mxu0 }
 0x208   : > { %v4251_v59 = vpop.f32.mrf.mxu1 }
 0x209   : > { %v5810_v9 = vadd.f32 %v2831_v26, %v2720_v29  ;;  %v2725_v28 = vadd.f32 %v4251_v59, %v5715_v13  ;;  %v2847_v4 = vpop.f32.mrf.mxu0 }
 0x20a   : > { %v2632_v31 = vpop.f32.mrf.mxu1 }
 0x20b   : > { %v5813_v22 = vadd.f32 %v4285_v3, %v2725_v28  ;;  %v2723_v42 = vadd.f32 %v2632_v31, %v5718_v6  ;;  %v4289_v5 = vpop.f32.mrf.mxu0 }
 0x20c   : > { %v4252_v36 = vpop.f32.mrf.mxu1 }
 0x20d   : > { %v5816_v30 = vadd.f32 %v2844_v52, %v2723_v42  ;;  %v2726_v19 = vadd.f32 %v4252_v36, %v5721_v24  ;;  %v2860_v1 = vpop.f32.mrf.mxu0 }
 0x20e   : > { %v2635_v49 = vpop.f32.mrf.mxu1 }
 0x20f   : > { %v5819_v61 = vadd.f32 %v4286_v14, %v2726_v19  ;;  %v2724_v56 = vadd.f32 %v2635_v49, %v5724_v20  ;;  %v4290_v27 = vpop.f32.mrf.mxu0 }
 0x210   : > { %v4255_v13 = vpop.f32.mrf.mxu1 }
 0x211   : > { %v5822_v37 = vadd.f32 %v2847_v4, %v2724_v56  ;;  %v2729_v60 = vadd.f32 %v4255_v13, %v5727_v44  ;;  %v2863_v62 = vpop.f32.mrf.mxu0 }
 0x212   : > { %v2648_v6 = vpop.f32.mrf.mxu1 }
 0x213   : > { %v5825_v26 = vadd.f32 %v4289_v5, %v2729_v60  ;;  %v2727_v46 = vadd.f32 %v2648_v6, %v5730_v11  ;;  %v4293_v51 = vpop.f32.mrf.mxu0 }
 0x214   : > { %v4256_v24 = vpop.f32.mrf.mxu1 }
 0x215   : > { %v5828_v3 = vadd.f32 %v2860_v1, %v2727_v46  ;;  %v2730_v48 = vadd.f32 %v4256_v24, %v5733_v8  ;;  %v2876_v18 = vpop.f32.mrf.mxu0 }
 0x216   : > { %v2651_v20 = vpop.f32.mrf.mxu1 }
 0x217   : > { %v5831_v52 = vadd.f32 %v4290_v27, %v2730_v48  ;;  %v2728_v35 = vadd.f32 %v2651_v20, %v5736_v55  ;;  %v4294_v29 = vpop.f32.mrf.mxu0 }
 0x218   : > { %v4259_v44 = vpop.f32.mrf.mxu1 }
 0x219   : > { %v5834_v14 = vadd.f32 %v2863_v62, %v2728_v35  ;;  %v2733_v59 = vadd.f32 %v4259_v44, %v5739_v58  ;;  %v2879_v28 = vpop.f32.mrf.mxu0 }
 0x21a   : > { %v2664_v11 = vpop.f32.mrf.mxu1 }
 0x21b   : > { %v5837_v4 = vadd.f32 %v4293_v51, %v2733_v59  ;;  %v2731_v31 = vadd.f32 %v2664_v11, %v5742_v7  ;;  %v4297_v42 = vpop.f32.mrf.mxu0 }
 0x21c   : > { %v4260_v8 = vpop.f32.mrf.mxu1 }
 0x21d   : > { %v5840_v5 = vadd.f32 %v2876_v18, %v2731_v31  ;;  %v2734_v36 = vadd.f32 %v4260_v8, %v5745_v45  ;;  %v2892_v19 = vpop.f32.mrf.mxu0 }
 0x21e   : > { %v2667_v55 = vpop.f32.mrf.mxu1 }
 0x21f   : > { %v5843_v1 = vadd.f32 %v4294_v29, %v2734_v36  ;;  %v2732_v49 = vadd.f32 %v2667_v55, %v5748_v34  ;;  %v4298_v56 = vpop.f32.mrf.mxu0  ;;  %v2308_v34 = vadd.f32 %v5770_v15, %v5673_v0  ;;  %v2306_v29 = vadd.f32 %v5774_v47, %v5676_v17 }
 0x220   : > { %v4263_v58 = vpop.f32.mrf.mxu1 }
 0x221   : > { %v5846_v27 = vadd.f32 %v2879_v28, %v2732_v49  ;;  %v2737_v13 = vadd.f32 %v4263_v58, %v5751_v41  ;;  %v2895_v60 = vpop.f32.mrf.mxu0 }
 0x222   : > { %v2680_v7 = vpop.f32.mrf.mxu1 }
 0x223   : > { %v5849_v62 = vadd.f32 %v4297_v42, %v2737_v13  ;;  %v2735_v6 = vadd.f32 %v2680_v7, %v5754_v54  ;;  %v4301_v45 = vpop.f32.mrf.mxu0 }
 0x224   : > { %v4264_v46 = vpop.f32.mrf.mxu1 }
 0x225   : > { %v5852_v51 = vadd.f32 %v2892_v19, %v2735_v6  ;;  %v2738_v24 = vadd.f32 %v4264_v46, %v5757_v2  ;;  %v2908_v35 = vpop.f32.mrf.mxu0  ;;  %v2514_v2 = vadd.f32 %v5760_v33, %v2308_v34 }
 0x226   : > { %v2683_v48 = vpop.f32.mrf.mxu1 }
 0x227   : > { %v5857_v18 = vadd.f32 %v4298_v56, %v2738_v24  ;;  %v2736_v41 = vadd.f32 %v2683_v48, %v5762_v40  ;;  %v4302_v11 = vpop.f32.mrf.mxu0  ;;  %v2512_v40 = vadd.f32 %v5765_v12, %v2306_v29 }
 0x228   : > { %v4267_v20 = vpop.f32.mrf.mxu1 }
 0x229   : > { %v5862_v54 = vadd.f32 %v2895_v60, %v2736_v41  ;;  %v2741_v44 = vadd.f32 %v4267_v20, %v5767_v21  ;;  %v2911_v36 = vpop.f32.mrf.mxu0 }
 0x22a   : > { %v2696_v59 = vpop.f32.mrf.mxu1 }
 0x22b   : > { %v5866_v28 = vadd.f32 %v4301_v45, %v2741_v44  ;;  %v2739_v0 = vadd.f32 %v2696_v59, %v5772_v50 }
 0x22c   : > { %v4268_v15 = vpop.f32.mrf.mxu1 }
 0x22d   : > { %v5870_v31 = vadd.f32 %v2908_v35, %v2739_v0  ;;  %v2742_v42 = vadd.f32 %v4268_v15, %v2514_v2  ;;  %2957 = sbr.rel (%p3772_p10) target bundleno = 649 (0x289), region = 40 }
 0x22e   : > { %v2699_v8 = vpop.f32.mrf.mxu1 }
 0x22f   : > { %v5872_v17 = vadd.f32 %v4302_v11, %v2742_v42  ;;  %v2740_v47 = vadd.f32 %v2699_v8, %v2512_v40 }
 0x231   : > { %v5874_v21 = vadd.f32 %v2911_v36, %v2740_v47 }
 0x232   : > { %vm2959_vm9 = vcmask 64512   ;;  %v3033_v34 = vmul.f32 %v5780_v63, %v5780_v63  ;;  %v3034_v20 = vmul.f32 %v5786_v10, %v5786_v10  ;;  %v3035_v35 = vmul.f32 %v5777_v43, %v5777_v43 }
 0x233   : > { %v2960_v33 = vsel %vm2959_vm9, %v5780_v63, 0.0  ;;  %v2961_v12 = vsel %vm2959_vm9, %v5786_v10, 0.0  ;;  %v2963_v50 = vsel %vm2959_vm9, %v5777_v43, 0.0  ;;  %v2965_v55 = vsel %vm2959_vm9, %v5783_v53, 0.0 }
 0x234   : > { %v2962_v19 = vadd.f32 %v2961_v12, %v2960_v33  ;;  %v2967_v56 = vsel %vm2959_vm9, %v5792_v39, 0.0  ;;  %v2969_v13 = vsel %vm2959_vm9, %v5798_v38, 0.0  ;;  %v2971_v7 = vsel %vm2959_vm9, %v5789_v23, 0.0 }
 0x235   : > { %v2973_v46 = vsel %vm2959_vm9, %v5795_v16, 0.0  ;;  %v2975_v24 = vsel %vm2959_vm9, %v5804_v25, 0.0  ;;  %v2977_v41 = vsel %vm2959_vm9, %v5810_v9, 0.0  ;;  %v2979_v44 = vsel %vm2959_vm9, %v5801_v57, 0.0 }
 0x236   : > { %v2964_v49 = vadd.f32 %v2963_v50, %v2962_v19  ;;  %v3036_v59 = vmul.f32 %v5783_v53, %v5783_v53  ;;  %v3065_v0 = vsel %vm2959_vm9, %v3033_v34, 0.0  ;;  %v2981_v15 = vsel %vm2959_vm9, %v5807_v32, 0.0 }
 0x237   : > { %v3037_v11 = vmul.f32 %v5792_v39, %v5792_v39  ;;  %v3066_v40 = vsel %vm2959_vm9, %v3034_v20, 0.0  ;;  %v3068_v42 = vsel %vm2959_vm9, %v3035_v35, 0.0  ;;  %v2983_v36 = vsel %vm2959_vm9, %v5816_v30, 0.0 }
 0x238   : > { %v2966_v58 = vadd.f32 %v2965_v55, %v2964_v49  ;;  %v3067_v47 = vadd.f32 %v3066_v40, %v3065_v0  ;;  %v3038_v33 = vmul.f32 %v5798_v38, %v5798_v38  ;;  %v3070_v12 = vsel %vm2959_vm9, %v3036_v59, 0.0 }
 0x239   : > { %v2985_v55 = vsel %vm2959_vm9, %v5822_v37, 0.0  ;;  %v3039_v49 = vmul.f32 %v5789_v23, %v5789_v23  ;;  %v2991_v35 = vsel %vm2959_vm9, %v5828_v3, 0.0  ;;  %v2993_v0 = vsel %vm2959_vm9, %v5834_v14, 0.0 }
 0x23a   : > { %v2968_v60 = vadd.f32 %v2967_v56, %v2966_v58  ;;  %v3069_v19 = vadd.f32 %v3068_v42, %v3067_v47  ;;  %v3072_v56 = vsel %vm2959_vm9, %v3037_v11, 0.0  ;;  %v3044_v47 = vmul.f32 %v5807_v32, %v5807_v32 }
 0x23b   : > { %v3076_v34 = vsel %vm2959_vm9, %v3039_v49, 0.0  ;;  %vm3030_vm10 = vcmask 57344  }
 0x23c   : > { %v2970_v6 = vadd.f32 %v2969_v13, %v2968_v60  ;;  %v3071_v13 = vadd.f32 %v3070_v12, %v3069_v19  ;;  %v2987_v60 = vsel %vm2959_vm9, %v5813_v22, 0.0  ;;  %v3045_v19 = vmul.f32 %v5816_v30, %v5816_v30 }
 0x23e   : > { %v2972_v45 = vadd.f32 %v2971_v7, %v2970_v6  ;;  %v3040_v7 = vmul.f32 %v5795_v16, %v5795_v16  ;;  %v3074_v6 = vsel %vm2959_vm9, %v3038_v33, 0.0 }
 0x240   : > { %v2974_v48 = vadd.f32 %v2973_v46, %v2972_v45  ;;  %v3073_v45 = vadd.f32 %v3072_v56, %v3071_v13  ;;  %v3046_v13 = vmul.f32 %v5822_v37, %v5822_v37 }
 0x242   : > { %v2976_v29 = vadd.f32 %v2975_v24, %v2974_v48  ;;  %v2989_v24 = vsel %vm2959_vm9, %v5819_v61, 0.0  ;;  %v3041_v48 = vmul.f32 %v5804_v25, %v5804_v25  ;;  %v3075_v20 = vadd.f32 %v3074_v6, %v3073_v45 }
 0x243   : > { %v3047_v45 = vmul.f32 %v5813_v22, %v5813_v22 }
 0x244   : > { %v2978_v2 = vadd.f32 %v2977_v41, %v2976_v29  ;;  %v3042_v29 = vmul.f32 %v5810_v9, %v5810_v9  ;;  %v3080_v11 = vsel %vm2959_vm9, %v3041_v48, 0.0 }
 0x246   : > { %v2980_v8 = vadd.f32 %v2979_v44, %v2978_v2  ;;  %v3078_v44 = vsel %vm2959_vm9, %v3040_v7, 0.0  ;;  %v3077_v2 = vadd.f32 %v3076_v34, %v3075_v20  ;;  %v3048_v20 = vmul.f32 %v5819_v61, %v5819_v61 }
 0x248   : > { %v2982_v50 = vadd.f32 %v2981_v15, %v2980_v8  ;;  %v3043_v15 = vmul.f32 %v5801_v57, %v5801_v57  ;;  %v3079_v42 = vadd.f32 %v3078_v44, %v3077_v2  ;;  %v2995_v8 = vsel %vm2959_vm9, %v5825_v26, 0.0 }
 0x249   : > { %v3049_v2 = vmul.f32 %v5828_v3, %v5828_v3 }
 0x24a   : > { %v2984_v58 = vadd.f32 %v2983_v36, %v2982_v50  ;;  %v3082_v36 = vsel %vm2959_vm9, %v3042_v29, 0.0  ;;  %v3081_v12 = vadd.f32 %v3080_v11, %v3079_v42  ;;  %v2997_v50 = vsel %vm2959_vm9, %v5831_v52, 0.0 }
 0x24b   : > { %v3050_v42 = vmul.f32 %v5834_v14, %v5834_v14 }
 0x24c   : > { %v2986_v46 = vadd.f32 %v2985_v55, %v2984_v58  ;;  %v3084_v55 = vsel %vm2959_vm9, %v3043_v15, 0.0  ;;  %v3083_v56 = vadd.f32 %v3082_v36, %v3081_v12  ;;  %v2999_v58 = vsel %vm2959_vm9, %v5840_v5, 0.0 }
 0x24d   : > { %v3051_v12 = vmul.f32 %v5825_v26, %v5825_v26 }
 0x24e   : > { %v2988_v41 = vadd.f32 %v2987_v60, %v2986_v46  ;;  %v3086_v60 = vsel %vm2959_vm9, %v3044_v47, 0.0  ;;  %v3085_v6 = vadd.f32 %v3084_v55, %v3083_v56  ;;  %v3001_v46 = vsel %vm2959_vm9, %v5846_v27, 0.0 }
 0x24f   : > { %v3052_v56 = vmul.f32 %v5831_v52, %v5831_v52 }
 0x250   : > { %v2990_v59 = vadd.f32 %v2989_v24, %v2988_v41  ;;  %v3088_v24 = vsel %vm2959_vm9, %v3045_v19, 0.0  ;;  %v3087_v34 = vadd.f32 %v3086_v60, %v3085_v6  ;;  %v3003_v41 = vsel %vm2959_vm9, %v5837_v4, 0.0 }
 0x251   : > { %v3053_v6 = vmul.f32 %v5840_v5, %v5840_v5 }
 0x252   : > { %v2992_v40 = vadd.f32 %v2991_v35, %v2990_v59  ;;  %v3090_v35 = vsel %vm2959_vm9, %v3046_v13, 0.0  ;;  %v3089_v44 = vadd.f32 %v3088_v24, %v3087_v34  ;;  %v3005_v59 = vsel %vm2959_vm9, %v5843_v1, 0.0 }
 0x253   : > { %v3054_v34 = vmul.f32 %v5846_v27, %v5846_v27 }
 0x254   : > { %v2994_v33 = vadd.f32 %v2993_v0, %v2992_v40  ;;  %v3092_v0 = vsel %vm2959_vm9, %v3047_v45, 0.0  ;;  %v3091_v11 = vadd.f32 %v3090_v35, %v3089_v44  ;;  %v3007_v40 = vsel %vm2959_vm9, %v5852_v51, 0.0 }
 0x255   : > { %v3055_v44 = vmul.f32 %v5837_v4, %v5837_v4 }
 0x256   : > { %v2996_v49 = vadd.f32 %v2995_v8, %v2994_v33  ;;  %v3094_v8 = vsel %vm2959_vm9, %v3048_v20, 0.0  ;;  %v3093_v36 = vadd.f32 %v3092_v0, %v3091_v11  ;;  %v3009_v33 = vsel %vm2959_vm9, %v5862_v54, 0.0 }
 0x257   : > { %v3056_v11 = vmul.f32 %v5843_v1, %v5843_v1 }
 0x258   : > { %v2998_v7 = vadd.f32 %v2997_v50, %v2996_v49  ;;  %v3096_v50 = vsel %vm2959_vm9, %v3049_v2, 0.0  ;;  %v3095_v55 = vadd.f32 %v3094_v8, %v3093_v36  ;;  %v3011_v49 = vsel %vm2959_vm9, %v5849_v62, 0.0 }
 0x259   : > { %v3057_v36 = vmul.f32 %v5852_v51, %v5852_v51 }
 0x25a   : > { %v3000_v48 = vadd.f32 %v2999_v58, %v2998_v7  ;;  %v3098_v58 = vsel %vm2959_vm9, %v3050_v42, 0.0  ;;  %v3097_v60 = vadd.f32 %v3096_v50, %v3095_v55  ;;  %v3013_v7 = vsel %vm2959_vm9, %v5857_v18, 0.0 }
 0x25b   : > { %v3110_v55 = vsel %vm2959_vm9, %v3056_v11, 0.0 }
 0x25c   : > { %v3002_v29 = vadd.f32 %v3001_v46, %v3000_v48  ;;  %v3100_v46 = vsel %vm2959_vm9, %v3051_v12, 0.0  ;;  %v3099_v24 = vadd.f32 %v3098_v58, %v3097_v60  ;;  %v3015_v48 = vsel %vm2959_vm9, %v5870_v31, 0.0 }
 0x25d   : > { %v3059_v58 = vmul.f32 %v5849_v62, %v5849_v62 }
 0x25e   : > { %v3004_v15 = vadd.f32 %v3003_v41, %v3002_v29  ;;  %v3102_v41 = vsel %vm2959_vm9, %v3052_v56, 0.0  ;;  %v3101_v35 = vadd.f32 %v3100_v46, %v3099_v24  ;;  %v3017_v29 = vsel %vm2959_vm9, %v5874_v21, 0.0 }
 0x260   : > { %v3006_v47 = vadd.f32 %v3005_v59, %v3004_v15  ;;  %v3104_v59 = vsel %vm2959_vm9, %v3053_v6, 0.0  ;;  %v3103_v0 = vadd.f32 %v3102_v41, %v3101_v35  ;;  %v3019_v15 = vsel %vm2959_vm9, %v5866_v28, 0.0 }
 0x261   : > { %v3060_v6 = vmul.f32 %v5857_v18, %v5857_v18  ;;  %v3062_v35 = vmul.f32 %v5874_v21, %v5874_v21 }
 0x262   : > { %v3008_v19 = vadd.f32 %v3007_v40, %v3006_v47  ;;  %v3106_v40 = vsel %vm2959_vm9, %v3054_v34, 0.0  ;;  %v3105_v8 = vadd.f32 %v3104_v59, %v3103_v0  ;;  %v3021_v47 = vsel %vm2959_vm9, %v5872_v17, 0.0 }
 0x263   : > { %v3116_v34 = vsel %vm2959_vm9, %v3059_v58, 0.0 }
 0x264   : > { %v3010_v13 = vadd.f32 %v3009_v33, %v3008_v19  ;;  %v3108_v33 = vsel %vm2959_vm9, %v3055_v44, 0.0  ;;  %v3107_v50 = vadd.f32 %v3106_v40, %v3105_v8  ;;  %v3058_v19 = vmul.f32 %v5862_v54, %v5862_v54  ;;  %v2958_v40 = vld [vmem:[#allocation2] sm:$0x1] }
 0x265   : > { %v3122_v8 = vsel %vm2959_vm9, %v3062_v35, 0.0 }
 0x266   : > { %v3012_v45 = vadd.f32 %v3011_v49, %v3010_v13  ;;  %v3109_v56 = vadd.f32 %v3108_v33, %v3107_v50  ;;  %v3112_v13 = vsel %vm2959_vm9, %v3057_v36, 0.0  ;;  %v3114_v46 = vsel %vm2959_vm9, %v3058_v19, 0.0 }
 0x268   : > { %v3014_v20 = vadd.f32 %v3013_v7, %v3012_v45  ;;  %v3111_v7 = vadd.f32 %v3110_v55, %v3109_v56 }
 0x26a   : > { %v3016_v2 = vadd.f32 %v3015_v48, %v3014_v20  ;;  %v3113_v24 = vadd.f32 %v3112_v13, %v3111_v7  ;;  %v3061_v48 = vmul.f32 %v5870_v31, %v5870_v31 }
 0x26c   : > { %v3018_v42 = vadd.f32 %v3017_v29, %v3016_v2  ;;  %v3115_v20 = vadd.f32 %v3114_v46, %v3113_v24  ;;  %v3118_v29 = vsel %vm2959_vm9, %v3060_v6, 0.0  ;;  %v3063_v2 = vmul.f32 %v5866_v28, %v5866_v28  ;;  %v3032_v6 = vld [vmem:[#allocation3] sm:$0x1] }
 0x26d   : > { %v3120_v0 = vsel %vm2959_vm9, %v3061_v48, 0.0 }
 0x26e   : > { %v3020_v12 = vadd.f32 %v3019_v15, %v3018_v42  ;;  %v3117_v59 = vadd.f32 %v3116_v34, %v3115_v20  ;;  %v3064_v42 = vmul.f32 %v5872_v17, %v5872_v17  ;;  %v3124_v33 = vsel %vm2959_vm9, %v3063_v2, 0.0 }
 0x270   : > { %v3022_v49 = vadd.f32 %v3021_v47, %v3020_v12  ;;  %v3119_v11 = vadd.f32 %v3118_v29, %v3117_v59  ;;  %v3126_v19 = vsel %vm2959_vm9, %v3064_v42, 0.0 }
 0x272   : > { %v3023_v60 = vrot.slane %v3022_v49, 4  ;;  %v3121_v36 = vadd.f32 %v3120_v0, %v3119_v11 }
 0x274   : > { %v3024_v45 = vadd.f32 %v3023_v60, %v3022_v49  ;;  %v3123_v50 = vadd.f32 %v3122_v8, %v3121_v36 }
 0x276   : > { %v3025_v41 = vrot.slane %v3024_v45, 2  ;;  %v3125_v55 = vadd.f32 %v3124_v33, %v3123_v50 }
 0x278   : > { %v3026_v44 = vadd.f32 %v3025_v41, %v3024_v45  ;;  %v3127_v49 = vadd.f32 %v3126_v19, %v3125_v55 }
 0x27a   : > { %v3027_v15 = vrot.slane %v3026_v44, 1  ;;  %v3128_v56 = vrot.slane %v3127_v49, 4 }
 0x27c   : > { %v3028_v47 = vadd.f32 %v3027_v15, %v3026_v44  ;;  %v3129_v58 = vadd.f32 %v3128_v56, %v3127_v49 }
 0x27e   : > { %v3029_v12 = vadd.f32 %v3028_v47, %v2958_v40  ;;  %v3130_v13 = vrot.slane %v3129_v58, 2 }
 0x280   : > { %3031 = vst.msk [vmem:[#allocation2] sm:$0x1] %vm3030_vm10, %v3029_v12  ;;  %v3131_v60 = vadd.f32 %v3130_v13, %v3129_v58 }
 0x282   : > { %v3132_v7 = vrot.slane %v3131_v60, 1 }
 0x284   : > { %v3133_v46 = vadd.f32 %v3132_v7, %v3131_v60 }
 0x286   : > { %v3134_v45 = vadd.f32 %v3133_v46, %v3032_v6 }
 0x288   : > { %3135 = vst.msk [vmem:[#allocation3] sm:$0x1] %vm3030_vm10, %v3134_v45 }
 0x289 PF: > { %p3773_p11 = scmp.ne.s32.totalorder %s4403_s13, 1 }
 0x28b   : > { %3139 = sbr.rel (%p3773_p11) target bundleno = 730 (0x2da), region = 44 }
 0x290   : > { %3141 = sbr.rel (!%p228_p6) target bundleno = 686 (0x2ae), region = 48  ;;  %v3142_v24 = vld [vmem:[#allocation2] sm:$0x1] (%p228_p6)  ;;  %v3144_v48 = vld [vmem:[#allocation3] sm:$0x1] (%p228_p6)  ;;  %vm3153_vm11 = vcmask (%p228_p6), 57344  }
 0x291   : > { %v3143_v34 = vmul.f32 (%p228_p6), 0.001953125, %v3142_v24  ;;  %v3145_v41 = vmul.f32 (%p228_p6), 0.001953125, %v3144_v48  ;;  %v3151_v59 = vld [vmem:[%s6229_s2] sm:$0x1] (%p228_p6)  ;;  %v3155_v15 = vld [vmem:[%s6229_s2 + $0x1] sm:$0x1] (%p228_p6) }
 0x293   : > { %v3146_v20 = vmul.f32 (%p228_p6), %v3143_v34, %v3143_v34  ;;  %v3156_v2 = vmul.f32 (%p228_p6), %v3151_v59, %v3143_v34 }
 0x295   : > { %v3147_v35 = vsub.f32 %v3145_v41, %v3146_v20 }
 0x297   : > { %v3148_v29 = vmax.f32 %v3147_v35, 0.0 }
 0x299   : > { %v3149_v44 = vadd.f32 1e-05, %v3148_v29 }
 0x29b   : > { %4375 = vrsqrt.f32 %v3149_v44 }
 0x2a8   : > { %v4376_v0 = vpop.eup %4375 }
 0x2a9   : > { %v3152_v11 = vmul.f32 %v4376_v0, %v3151_v59  ;;  %v3157_v40 = vmul.f32 %v4376_v0, %v3156_v2 }
 0x2ab   : > { %3154 = vst.msk [vmem:[#allocation4] sm:$0x1] %vm3153_vm11, %v3152_v11  ;;  %v3158_v42 = vsub.f32 %v3155_v15, %v3157_v40 }
 0x2ad   : > { %3159 = vst.msk [vmem:[#allocation5] sm:$0x1] %vm3153_vm11, %v3158_v42 }
 0x2ae PF: > { %vm3398_vm12 = vcmask 60416  }
 0x2b2   : > { %v6048_v8 = vld [vmem:[#allocation4] ss:$0 sm:$0xff] }
 0x2b3   : > { %v3167_v36 = vmul.f32 %v6048_v8, %v5780_v63  ;;  %v3168_v33 = vmul.f32 %v6048_v8, %v5786_v10  ;;  %v3169_v12 = vmul.f32 %v6048_v8, %v5777_v43  ;;  %v3170_v50 = vmul.f32 %v6048_v8, %v5783_v53 }
 0x2b4   : > { %v6050_v47 = vld [vmem:[#allocation5] ss:$0 sm:$0xff]  ;;  %v3171_v19 = vmul.f32 %v6048_v8, %v5792_v39  ;;  %v3172_v55 = vmul.f32 %v6048_v8, %v5798_v38  ;;  %v3173_v49 = vmul.f32 %v6048_v8, %v5789_v23  ;;  %v3174_v63 = vmul.f32 %v6048_v8, %v5795_v16 }
 0x2b5   : > { %v3206_v10 = vadd.f32 %v6050_v47, %v3167_v36  ;;  %v3207_v56 = vadd.f32 %v6050_v47, %v3168_v33  ;;  %v3208_v43 = vadd.f32 %v6050_v47, %v3169_v12  ;;  %v3209_v53 = vadd.f32 %v6050_v47, %v3170_v50 }
 0x2b6   : > { %v3210_v58 = vadd.f32 %v6050_v47, %v3171_v19  ;;  %v3211_v39 = vadd.f32 %v6050_v47, %v3172_v55  ;;  %v3212_v38 = vadd.f32 %v6050_v47, %v3173_v49  ;;  %v3213_v13 = vadd.f32 %v6050_v47, %v3174_v63 }
 0x2b7   : > { %v3238_v23 = vmax.f32 %v3206_v10, 0.0  ;;  %v3239_v60 = vmax.f32 %v3207_v56, 0.0  ;;  %v3240_v16 = vmax.f32 %v3208_v43, 0.0  ;;  %v3241_v7 = vmax.f32 %v3209_v53, 0.0 }
 0x2b8   : > { %v3242_v6 = vmax.f32 %v3210_v58, 0.0  ;;  %v3243_v46 = vmax.f32 %v3211_v39, 0.0  ;;  %v3244_v45 = vmax.f32 %v3212_v38, 0.0  ;;  %v3245_v24 = vmax.f32 %v3213_v13, 0.0 }
 0x2b9   : > { %v3812_v48 = vpack.c.bf16 %v3238_v23, %v3238_v23  ;;  %v3813_v34 = vpack.c.bf16 %v3239_v60, %v3239_v60  ;;  %v3814_v41 = vpack.c.bf16 %v3240_v16, %v3240_v16  ;;  %v3815_v20 = vpack.c.bf16 %v3241_v7, %v3241_v7 }
 0x2ba   : > { %v3816_v35 = vpack.c.bf16 %v3242_v6, %v3242_v6  ;;  %v3817_v29 = vpack.c.bf16 %v3243_v46, %v3243_v46  ;;  %v3818_v44 = vpack.c.bf16 %v3244_v45, %v3244_v45  ;;  %v3819_v59 = vpack.c.bf16 %v3245_v24, %v3245_v24 }
 0x2bb   : > { %3399 = vst.msk [vmem:[%s4488_s28] sm:$0xf] %vm3398_vm12, %v3812_v48  ;;  %3400 = vst.msk [vmem:[%s4488_s28 + $0x4] sm:$0xf] %vm3398_vm12, %v3813_v34  ;;  %v3175_v2 = vmul.f32 %v6048_v8, %v5804_v25  ;;  %v3176_v0 = vmul.f32 %v6048_v8, %v5810_v9  ;;  %v3177_v15 = vmul.f32 %v6048_v8, %v5801_v57 }
 0x2bc   : > { %3401 = vst.msk [vmem:[%s4488_s28 + $0x8] sm:$0xf] %vm3398_vm12, %v3814_v41  ;;  %3402 = vst.msk [vmem:[%s4488_s28 + $0xc] sm:$0xf] %vm3398_vm12, %v3815_v20  ;;  %v3178_v11 = vmul.f32 %v6048_v8, %v5807_v32  ;;  %v3179_v25 = vmul.f32 %v6048_v8, %v5816_v30  ;;  %v3180_v9 = vmul.f32 %v6048_v8, %v5822_v37 }
 0x2bd   : > { %3403 = vst.msk [vmem:[%s4488_s28 + $0x10] sm:$0xf] %vm3398_vm12, %v3816_v35  ;;  %3404 = vst.msk [vmem:[%s4488_s28 + $0x14] sm:$0xf] %vm3398_vm12, %v3817_v29  ;;  %v3181_v57 = vmul.f32 %v6048_v8, %v5813_v22  ;;  %v3182_v32 = vmul.f32 %v6048_v8, %v5819_v61  ;;  %v3214_v40 = vadd.f32 %v6050_v47, %v3175_v2 }
 0x2be   : > { %3405 = vst.msk [vmem:[%s4488_s28 + $0x18] sm:$0xf] %vm3398_vm12, %v3818_v44  ;;  %3406 = vst.msk [vmem:[%s4488_s28 + $0x1c] sm:$0xf] %vm3398_vm12, %v3819_v59  ;;  %v3215_v42 = vadd.f32 %v6050_v47, %v3176_v0  ;;  %v3216_v36 = vadd.f32 %v6050_v47, %v3177_v15  ;;  %v3217_v33 = vadd.f32 %v6050_v47, %v3178_v11 }
 0x2bf   : > { %v3218_v12 = vadd.f32 %v6050_v47, %v3179_v25  ;;  %v3219_v30 = vadd.f32 %v6050_v47, %v3180_v9  ;;  %v3220_v37 = vadd.f32 %v6050_v47, %v3181_v57  ;;  %v3221_v50 = vadd.f32 %v6050_v47, %v3182_v32 }
 0x2c0   : > { %v3246_v22 = vmax.f32 %v3214_v40, 0.0  ;;  %v3247_v19 = vmax.f32 %v3215_v42, 0.0  ;;  %v3248_v61 = vmax.f32 %v3216_v36, 0.0  ;;  %v3249_v55 = vmax.f32 %v3217_v33, 0.0 }
 0x2c1   : > { %v3250_v49 = vmax.f32 %v3218_v12, 0.0  ;;  %v3251_v63 = vmax.f32 %v3219_v30, 0.0  ;;  %v3252_v10 = vmax.f32 %v3220_v37, 0.0  ;;  %v3253_v56 = vmax.f32 %v3221_v50, 0.0 }
 0x2c2   : > { %v3820_v43 = vpack.c.bf16 %v3246_v22, %v3246_v22  ;;  %v3821_v53 = vpack.c.bf16 %v3247_v19, %v3247_v19  ;;  %v3822_v58 = vpack.c.bf16 %v3248_v61, %v3248_v61  ;;  %v3823_v39 = vpack.c.bf16 %v3249_v55, %v3249_v55 }
 0x2c3   : > { %v3824_v38 = vpack.c.bf16 %v3250_v49, %v3250_v49  ;;  %v3825_v13 = vpack.c.bf16 %v3251_v63, %v3251_v63  ;;  %v3826_v23 = vpack.c.bf16 %v3252_v10, %v3252_v10  ;;  %v3827_v60 = vpack.c.bf16 %v3253_v56, %v3253_v56 }
 0x2c4   : > { %3407 = vst.msk [vmem:[%s4488_s28 + $0x20] sm:$0xf] %vm3398_vm12, %v3820_v43  ;;  %3408 = vst.msk [vmem:[%s4488_s28 + $0x24] sm:$0xf] %vm3398_vm12, %v3821_v53  ;;  %v3183_v16 = vmul.f32 %v6048_v8, %v5828_v3  ;;  %v3184_v7 = vmul.f32 %v6048_v8, %v5834_v14  ;;  %v3185_v6 = vmul.f32 %v6048_v8, %v5825_v26 }
 0x2c5   : > { %3409 = vst.msk [vmem:[%s4488_s28 + $0x28] sm:$0xf] %vm3398_vm12, %v3822_v58  ;;  %3410 = vst.msk [vmem:[%s4488_s28 + $0x2c] sm:$0xf] %vm3398_vm12, %v3823_v39  ;;  %v3186_v46 = vmul.f32 %v6048_v8, %v5831_v52  ;;  %v3187_v3 = vmul.f32 %v6048_v8, %v5840_v5  ;;  %v3188_v14 = vmul.f32 %v6048_v8, %v5846_v27 }
 0x2c6   : > { %3411 = vst.msk [vmem:[%s4488_s28 + $0x30] sm:$0xf] %vm3398_vm12, %v3824_v38  ;;  %3412 = vst.msk [vmem:[%s4488_s28 + $0x34] sm:$0xf] %vm3398_vm12, %v3825_v13  ;;  %v3189_v26 = vmul.f32 %v6048_v8, %v5837_v4  ;;  %v3190_v52 = vmul.f32 %v6048_v8, %v5843_v1  ;;  %v3222_v45 = vadd.f32 %v6050_v47, %v3183_v16 }
 0x2c7   : > { %3413 = vst.msk [vmem:[%s4488_s28 + $0x38] sm:$0xf] %vm3398_vm12, %v3826_v23  ;;  %3414 = vst.msk [vmem:[%s4488_s28 + $0x3c] sm:$0xf] %vm3398_vm12, %v3827_v60  ;;  %v3223_v24 = vadd.f32 %v6050_v47, %v3184_v7  ;;  %v3224_v48 = vadd.f32 %v6050_v47, %v3185_v6  ;;  %v3225_v34 = vadd.f32 %v6050_v47, %v3186_v46 }
 0x2c8   : > { %v3226_v41 = vadd.f32 %v6050_v47, %v3187_v3  ;;  %v3227_v5 = vadd.f32 %v6050_v47, %v3188_v14  ;;  %v3228_v27 = vadd.f32 %v6050_v47, %v3189_v26  ;;  %v3229_v20 = vadd.f32 %v6050_v47, %v3190_v52 }
 0x2c9   : > { %v3254_v4 = vmax.f32 %v3222_v45, 0.0  ;;  %v3255_v35 = vmax.f32 %v3223_v24, 0.0  ;;  %v3256_v1 = vmax.f32 %v3224_v48, 0.0  ;;  %v3257_v29 = vmax.f32 %v3225_v34, 0.0 }
 0x2ca   : > { %v3258_v44 = vmax.f32 %v3226_v41, 0.0  ;;  %v3259_v59 = vmax.f32 %v3227_v5, 0.0  ;;  %v3260_v2 = vmax.f32 %v3228_v27, 0.0  ;;  %v3261_v0 = vmax.f32 %v3229_v20, 0.0 }
 0x2cb   : > { %v3828_v15 = vpack.c.bf16 %v3254_v4, %v3254_v4  ;;  %v3829_v11 = vpack.c.bf16 %v3255_v35, %v3255_v35  ;;  %v3830_v25 = vpack.c.bf16 %v3256_v1, %v3256_v1  ;;  %v3831_v9 = vpack.c.bf16 %v3257_v29, %v3257_v29 }
 0x2cc   : > { %v3832_v57 = vpack.c.bf16 %v3258_v44, %v3258_v44  ;;  %v3833_v32 = vpack.c.bf16 %v3259_v59, %v3259_v59  ;;  %v3834_v40 = vpack.c.bf16 %v3260_v2, %v3260_v2  ;;  %v3835_v42 = vpack.c.bf16 %v3261_v0, %v3261_v0 }
 0x2cd   : > { %3415 = vst.msk [vmem:[%s4488_s28 + $0x40] sm:$0xf] %vm3398_vm12, %v3828_v15  ;;  %3416 = vst.msk [vmem:[%s4488_s28 + $0x44] sm:$0xf] %vm3398_vm12, %v3829_v11  ;;  %v3191_v36 = vmul.f32 %v6048_v8, %v5852_v51  ;;  %v3192_v33 = vmul.f32 %v6048_v8, %v5862_v54  ;;  %v3193_v12 = vmul.f32 %v6048_v8, %v5849_v62 }
 0x2ce   : > { %3417 = vst.msk [vmem:[%s4488_s28 + $0x48] sm:$0xf] %vm3398_vm12, %v3830_v25  ;;  %3418 = vst.msk [vmem:[%s4488_s28 + $0x4c] sm:$0xf] %vm3398_vm12, %v3831_v9  ;;  %v3194_v30 = vmul.f32 %v6048_v8, %v5857_v18  ;;  %v3195_v51 = vmul.f32 %v6048_v8, %v5870_v31  ;;  %v3196_v54 = vmul.f32 %v6048_v8, %v5874_v21 }
 0x2cf   : > { %3419 = vst.msk [vmem:[%s4488_s28 + $0x50] sm:$0xf] %vm3398_vm12, %v3832_v57  ;;  %3420 = vst.msk [vmem:[%s4488_s28 + $0x54] sm:$0xf] %vm3398_vm12, %v3833_v32  ;;  %v3197_v62 = vmul.f32 %v6048_v8, %v5866_v28  ;;  %v3198_v18 = vmul.f32 %v6048_v8, %v5872_v17  ;;  %v3230_v37 = vadd.f32 %v6050_v47, %v3191_v36 }
 0x2d0   : > { %3421 = vst.msk [vmem:[%s4488_s28 + $0x58] sm:$0xf] %vm3398_vm12, %v3834_v40  ;;  %3422 = vst.msk [vmem:[%s4488_s28 + $0x5c] sm:$0xf] %vm3398_vm12, %v3835_v42  ;;  %v3231_v50 = vadd.f32 %v6050_v47, %v3192_v33  ;;  %v3232_v22 = vadd.f32 %v6050_v47, %v3193_v12  ;;  %v3233_v19 = vadd.f32 %v6050_v47, %v3194_v30 }
 0x2d1   : > { %v3234_v61 = vadd.f32 %v6050_v47, %v3195_v51  ;;  %v3235_v31 = vadd.f32 %v6050_v47, %v3196_v54  ;;  %v3236_v21 = vadd.f32 %v6050_v47, %v3197_v62  ;;  %v3237_v55 = vadd.f32 %v6050_v47, %v3198_v18 }
 0x2d2   : > { %v3262_v28 = vmax.f32 %v3230_v37, 0.0  ;;  %v3263_v49 = vmax.f32 %v3231_v50, 0.0  ;;  %v3264_v17 = vmax.f32 %v3232_v22, 0.0  ;;  %v3265_v8 = vmax.f32 %v3233_v19, 0.0 }
 0x2d3   : > { %v3266_v63 = vmax.f32 %v3234_v61, 0.0  ;;  %v3267_v10 = vmax.f32 %v3235_v31, 0.0  ;;  %v3268_v56 = vmax.f32 %v3236_v21, 0.0  ;;  %v3269_v43 = vmax.f32 %v3237_v55, 0.0 }
 0x2d4   : > { %v3836_v53 = vpack.c.bf16 %v3262_v28, %v3262_v28  ;;  %v3837_v58 = vpack.c.bf16 %v3263_v49, %v3263_v49  ;;  %v3838_v39 = vpack.c.bf16 %v3264_v17, %v3264_v17  ;;  %v3839_v47 = vpack.c.bf16 %v3265_v8, %v3265_v8 }
 0x2d5   : > { %v3840_v38 = vpack.c.bf16 %v3266_v63, %v3266_v63  ;;  %v3841_v13 = vpack.c.bf16 %v3267_v10, %v3267_v10  ;;  %v3842_v23 = vpack.c.bf16 %v3268_v56, %v3268_v56  ;;  %v3843_v60 = vpack.c.bf16 %v3269_v43, %v3269_v43 }
 0x2d6   : > { %3423 = vst.msk [vmem:[%s4488_s28 + $0x60] sm:$0xf] %vm3398_vm12, %v3836_v53  ;;  %3424 = vst.msk [vmem:[%s4488_s28 + $0x64] sm:$0xf] %vm3398_vm12, %v3837_v58 }
 0x2d7   : > { %3425 = vst.msk [vmem:[%s4488_s28 + $0x68] sm:$0xf] %vm3398_vm12, %v3838_v39  ;;  %3426 = vst.msk [vmem:[%s4488_s28 + $0x6c] sm:$0xf] %vm3398_vm12, %v3839_v47 }
 0x2d8   : > { %3427 = vst.msk [vmem:[%s4488_s28 + $0x70] sm:$0xf] %vm3398_vm12, %v3840_v38  ;;  %3428 = vst.msk [vmem:[%s4488_s28 + $0x74] sm:$0xf] %vm3398_vm12, %v3841_v13 }
 0x2d9   : > { %3429 = vst.msk [vmem:[%s4488_s28 + $0x78] sm:$0xf] %vm3398_vm12, %v3842_v23  ;;  %3430 = vst.msk [vmem:[%s4488_s28 + $0x7c] sm:$0xf] %vm3398_vm12, %v3843_v60 }
 0x2da PF: > { %s13_s16 = sadd.s32 1, %s4415_s16   ;;  %s6345_s12 = smov %s4407_s14 }
 0x2db   : > { %p10_p12 = scmp.ge.s32.totalorder %s13_s16, 6   ;;  %s6346_s13 = smov %s4411_s15 }
 0x2dc   : > { %s6347_s14 = smov %s6350_s17  ;;  %s6348_s15 = smov %s6354_s18 }
 0x2dd   :  { %12 = sbr.rel (!%p10_p12) target bundleno = 3 (0x3), region = 86 }

</bundles_post_ra>
